<compile_context>
chip_gen: v7x
topology: tpu7x:2x2x1
jax: 0.10.0
libtpu: 0.0.40
codegen_flags: <defaults>
</compile_context>

<pallas_src>
import functools

import jax
import jax.numpy as jnp
from jax import lax
from jax.experimental import pallas as pl
from jax.experimental.pallas import tpu as pltpu

COMPUTE_DTYPE = jnp.bfloat16   # MXU input dtype (accumulation is always f32)


# --------------------------- LSTM recurrence kernel ---------------------------
def _make_lstm_kernel(seq_len, batch_block, hidden, in_max, chunk_t):
    T, Bblk, H, CT = seq_len, batch_block, hidden, chunk_t
    NC = T // CT
    time_unroll = CT if CT <= 8 else 8   # partial unroll keeps LLO visibility

    def kernel(x_ref, h0_ref, c0_ref, wih_ref, whh_ref, b_ref,
               seq_ref, hn_ref, cn_ref, xproj_sc):
        # grid = (num_batch_blocks, num_layers); layer axis innermost so the
        # bf16 seq output block (same block index for every layer) stays VMEM
        # resident and is re-read as the next layer's input.
        l = pl.program_id(1)
        cd = x_ref.dtype

        w_ih = wih_ref[0]                        # (in_max, 4H) bf16, this layer
        w_hh = whh_ref[0]                        # (H, 4H)      bf16, this layer
        bias = b_ref[0]                          # (1, 4H)      f32 (b_ih+b_hh)
        h0 = h0_ref[0].astype(jnp.float32)       # (Bblk, H)
        c0 = c0_ref[0].astype(jnp.float32)

        def chunk_body(ci, carry):
            h, c = carry
            t0 = pl.multiple_of(ci * CT, CT)

            # Hoisted, non-recurrent input projection for CT timesteps at once
            # (big-M MXU matmul); f32 scratch is chunk-sized, not T-sized.
            @pl.when(l == 0)
            def _():
                xin = x_ref[pl.ds(t0, CT), :, :].reshape(CT * Bblk, in_max)
                xproj_sc[...] = jnp.dot(
                    xin, w_ih, preferred_element_type=jnp.float32) + bias

            @pl.when(l > 0)
            def _():
                # Previous layer's bf16 outputs; this chunk's rows have not
                # been overwritten yet (writes below only touch chunk rows).
                sin = seq_ref[pl.ds(t0, CT), :, :].reshape(CT * Bblk, H)
                xproj_sc[...] = jnp.dot(
                    sin, w_ih[:H], preferred_element_type=jnp.float32) + bias

            def step(tt, carry2):
                h, c = carry2
                off = pl.multiple_of(tt * Bblk, Bblk)
                gates = (xproj_sc[pl.ds(off, Bblk), :]
                         + jnp.dot(h.astype(cd), w_hh,
                                   preferred_element_type=jnp.float32))
                i = jax.nn.sigmoid(gates[:, 0 * H:1 * H])
                f = jax.nn.sigmoid(gates[:, 1 * H:2 * H])
                g = jnp.tanh(gates[:, 2 * H:3 * H])
                o = jax.nn.sigmoid(gates[:, 3 * H:4 * H])
                c_new = f * c + i * g
                h_new = o * jnp.tanh(c_new)
                # bf16 inter-layer activation (halves footprint, no bulk cast);
                # the h/c carries stay f32.
                seq_ref[t0 + tt] = h_new.astype(seq_ref.dtype)
                return h_new, c_new

            return lax.fori_loop(0, CT, step, (h, c), unroll=time_unroll)

        h_fin, c_fin = lax.fori_loop(0, NC, chunk_body, (h0, c0))
        hn_ref[0] = h_fin.astype(hn_ref.dtype)
        cn_ref[0] = c_fin.astype(cn_ref.dtype)

    return kernel


# ------------------------------ tiled fc kernel --------------------------------
def _fc_kernel(x_ref, w_ref, b_ref, o_ref):
    o_ref[...] = (jnp.dot(x_ref[...], w_ref[...],
                          preferred_element_type=jnp.float32)
                  + b_ref[...]).astype(o_ref.dtype)


# --------------------------------- helpers -------------------------------------
def _pick_tile(dim, max_tile, quantum):
    """Largest divisor of `dim` that is a multiple of `quantum` and <= max_tile
    (falls back to the full dim, which is always a legal block)."""
    if dim <= max_tile:
        return dim
    t = (max_tile // quantum) * quantum
    while t >= quantum:
        if dim % t == 0:
            return t
        t -= quantum
    return dim


def _vmem_limit(est_bytes):
    # Raise the scoped-VMEM limit above the 16/32 MiB defaults, but stay below
    # v7x's 64 MiB physical VMEM.
    return int(min(56 * 2**20, max(32 * 2**20, 2 * est_bytes)))


# -------------------------------- parameters -----------------------------------
def init_params(key, vocab_size, embed_size, hidden_size, num_layers,
                compute_dtype=COMPUTE_DTYPE):
    H, E, L = hidden_size, embed_size, num_layers
    in_max = max(E, H)
    scale = H ** -0.5
    keys = jax.random.split(key, 3 + 3 * L)

    w_ih, w_hh, b = [], [], []
    for l in range(L):
        in_dim = E if l == 0 else H
        k1, k2, k3 = keys[3 + 3 * l:6 + 3 * l]
        w = jax.random.uniform(k1, (in_dim, 4 * H), jnp.float32, -scale, scale)
        # zero-pad rows so all layers stack onto one (L, in_max, 4H) array and
        # can be streamed by a single layer grid axis.
        w = jnp.pad(w, ((0, in_max - in_dim), (0, 0)))
        w_ih.append(w.astype(compute_dtype))
        w_hh.append(jax.random.uniform(k2, (H, 4 * H), jnp.float32,
                                       -scale, scale).astype(compute_dtype))
        b.append(jax.random.uniform(k3, (1, 4 * H), jnp.float32, -scale, scale))

    return {
        "embedding": jax.random.normal(keys[0], (vocab_size, E),
                                       jnp.float32).astype(compute_dtype),
        "fc_w": jax.random.uniform(keys[1], (H, vocab_size), jnp.float32,
                                   -scale, scale).astype(compute_dtype),
        "fc_b": jax.random.uniform(keys[2], (1, vocab_size), jnp.float32,
                                   -scale, scale),
        # stored pre-transposed (x @ w_ih, h @ w_hh), gate order i,f,g,o,
        # b_ih + b_hh folded into one f32 bias.
        "w_ih": jnp.stack(w_ih),          # (L, in_max, 4H) bf16
        "w_hh": jnp.stack(w_hh),          # (L, H, 4H)      bf16
        "b":    jnp.stack(b),             # (L, 1, 4H)      f32
    }


def init_state(num_layers, batch_size, hidden_size):
    z = jnp.zeros((num_layers, batch_size, hidden_size), jnp.float32)
    return (z, z)


# ------------------------------- model forward ---------------------------------
def lstm_generator_forward(params, x_tokens, prev_state, *,
                           batch_block=None, chunk_t=None):
    """x_tokens: (B, T) int32 (batch_first); prev_state: (h, c), each (L, B, H).
    Returns logits (B, T, vocab) f32 and updated (h_n, c_n)."""
    h0, c0 = prev_state
    L, B, H = h0.shape
    T = x_tokens.shape[1]
    V = params["fc_w"].shape[1]
    E = params["embedding"].shape[1]
    in_max = params["w_ih"].shape[1]

    Bblk = B if batch_block is None else batch_block
    assert B % Bblk == 0 and (Bblk % 8 == 0 or Bblk == B)
    CT = T if chunk_t is None else chunk_t
    assert T % CT == 0
    NB = B // Bblk

    # Time-major embedding gather: only the tiny (B,T) index array is
    # transposed, never the activations.
    # TODO(synk): fuse the gather into the kernel (scalar-prefetched ids + row
    # DMA from an HBM-resident table) to avoid materializing (T,B,E) in HBM.
    ids_tm = jnp.transpose(x_tokens)                         # (T, B)
    x_tm = jnp.take(params["embedding"], ids_tm, axis=0)     # (T, B, E) bf16
    if in_max > E:
        x_tm = jnp.pad(x_tm, ((0, 0), (0, 0), (0, in_max - E)))

    lstm_kernel = _make_lstm_kernel(T, Bblk, H, in_max, CT)

    est_lstm = (2 * T * Bblk * (in_max + H) * 2          # x + seq blocks (bf16, 2-buf)
                + 2 * (in_max + H) * 4 * H * 2           # one layer's weights, 2-buf
                + 2 * 4 * H * 4                          # bias
                + 8 * Bblk * H * 4                       # h0/c0/hn/cn blocks
                + CT * Bblk * 4 * H * 4)                 # xproj scratch

    seq_tm, h_n, c_n = pl.pallas_call(
        lstm_kernel,
        grid=(NB, L),
        in_specs=[
            pl.BlockSpec((T, Bblk, in_max), lambda bb, l: (0, bb, 0)),
            pl.BlockSpec((1, Bblk, H),      lambda bb, l: (l, bb, 0)),
            pl.BlockSpec((1, Bblk, H),      lambda bb, l: (l, bb, 0)),
            pl.BlockSpec((1, in_max, 4 * H), lambda bb, l: (l, 0, 0)),
            pl.BlockSpec((1, H, 4 * H),      lambda bb, l: (l, 0, 0)),
            pl.BlockSpec((1, 1, 4 * H),      lambda bb, l: (l, 0, 0)),
        ],
        out_specs=(
            pl.BlockSpec((T, Bblk, H), lambda bb, l: (0, bb, 0)),   # resident
            pl.BlockSpec((1, Bblk, H), lambda bb, l: (l, bb, 0)),
            pl.BlockSpec((1, Bblk, H), lambda bb, l: (l, bb, 0)),
        ),
        out_shape=(jax.ShapeDtypeStruct((T, B, H), COMPUTE_DTYPE),
                   jax.ShapeDtypeStruct((L, B, H), jnp.float32),
                   jax.ShapeDtypeStruct((L, B, H), jnp.float32)),
        scratch_shapes=[pltpu.VMEM((CT * Bblk, 4 * H), jnp.float32)],
        compiler_params=pltpu.CompilerParams(
            dimension_semantics=("parallel", "arbitrary"),
            vmem_limit_bytes=_vmem_limit(est_lstm)),
    )(x_tm, h0, c0, params["w_ih"], params["w_hh"], params["b"])

    # Small (H-wide, bf16) layout fix so the big vocab projection reads and
    # writes batch-major blocks directly: replaces the old (T,B,V) f32 logits
    # transpose with a V/H-times-smaller (T,B,H) bf16 one.
    rows = jnp.transpose(seq_tm, (1, 0, 2)).reshape(B * T, H)

    M = B * T
    tm = _pick_tile(M, 128, 8)
    tn = _pick_tile(V, 512, 128)        # lane-dense, >=128-wide output tiles
    est_fc = 2 * (tm * H * 2 + H * tn * 2 + tn * 4 + tm * tn * 4)

    logits_flat = pl.pallas_call(
        _fc_kernel,
        grid=(V // tn, M // tm),        # vocab tile outermost: each fc_w tile
        in_specs=[                      # is DMA'd once and reused for all rows
            pl.BlockSpec((tm, H), lambda j, i: (i, 0)),
            pl.BlockSpec((H, tn), lambda j, i: (0, j)),
            pl.BlockSpec((1, tn), lambda j, i: (0, j)),
        ],
        out_specs=pl.BlockSpec((tm, tn), lambda j, i: (i, j)),
        out_shape=jax.ShapeDtypeStruct((M, V), jnp.float32),
        compiler_params=pltpu.CompilerParams(
            dimension_semantics=("parallel", "parallel"),
            vmem_limit_bytes=_vmem_limit(est_fc)),
    )(rows, params["fc_w"], params["fc_b"])

    logits = logits_flat.reshape(B, T, V)
    return logits, (h_n, c_n)


# ------------------------------ pure-JAX reference ------------------------------
def _ref_forward(params, x_tokens, prev_state):
    """Same arithmetic as the kernels (bf16 matmul inputs, f32 acc/elementwise)."""
    cd = params["w_ih"].dtype
    B, T = x_tokens.shape
    h_all, c_all = prev_state
    L, _, H = h_all.shape
    E = params["embedding"].shape[1]
    layer_in = jnp.take(params["embedding"], x_tokens, axis=0)     # (B, T, E)
    h_list, c_list = [], []
    for l in range(L):
        in_dim = E if l == 0 else H
        w_ih = params["w_ih"][l, :in_dim]
        w_hh = params["w_hh"][l]
        b = params["b"][l, 0]
        xp = (jnp.dot(layer_in.astype(cd).reshape(B * T, in_dim), w_ih,
                      preferred_element_type=jnp.float32).reshape(B, T, 4 * H)
              + b)
        ht = h_all[l].astype(jnp.float32)
        ct = c_all[l].astype(jnp.float32)
        outs = []
        for t in range(T):
            gates = xp[:, t] + jnp.dot(ht.astype(cd), w_hh,
                                       preferred_element_type=jnp.float32)
            i = jax.nn.sigmoid(gates[:, 0 * H:1 * H])
            f = jax.nn.sigmoid(gates[:, 1 * H:2 * H])
            g = jnp.tanh(gates[:, 2 * H:3 * H])
            o = jax.nn.sigmoid(gates[:, 3 * H:4 * H])
            ct = f * ct + i * g
            ht = o * jnp.tanh(ct)
            outs.append(ht)
        layer_in = jnp.stack(outs, axis=1)                          # (B, T, H)
        h_list.append(ht)
        c_list.append(ct)
    logits = (jnp.dot(layer_in.astype(cd).reshape(B * T, H), params["fc_w"],
                      preferred_element_type=jnp.float32).reshape(B, T, -1)
              + params["fc_b"][0])
    return logits, (jnp.stack(h_list), jnp.stack(c_list))


# ------------------------------------ main --------------------------------------
if __name__ == "__main__":
    vocab_size, embed_size, hidden_size, num_layers = 1024, 32, 32, 2
    batch_size, seq_len = 16, 16

    key = jax.random.PRNGKey(0)
    kp, kx = jax.random.split(key)
    params = init_params(kp, vocab_size, embed_size, hidden_size, num_layers)
    x_tokens = jax.random.randint(kx, (batch_size, seq_len), 0, vocab_size,
                                  dtype=jnp.int32)
    state0 = init_state(num_layers, batch_size, hidden_size)

    # batch_block=8 / chunk_t=8 exercise the batch grid axis and the chunked
    # x-projection (and give v7x's two cores one batch block each).
    fwd = jax.jit(functools.partial(lstm_generator_forward,
                                    batch_block=8, chunk_t=8))
    logits, (h_n, c_n) = fwd(params, x_tokens, state0)
    jax.block_until_ready((logits, h_n, c_n))

    ref_logits, (ref_h, ref_c) = _ref_forward(params, x_tokens, state0)

    assert logits.shape == (batch_size, seq_len, vocab_size)
    assert h_n.shape == (num_layers, batch_size, hidden_size)
    assert c_n.shape == (num_layers, batch_size, hidden_size)
    assert jnp.allclose(logits, ref_logits, atol=1e-2, rtol=1e-2)
    assert jnp.allclose(h_n, ref_h, atol=1e-2, rtol=1e-2)
    assert jnp.allclose(c_n, ref_c, atol=1e-2, rtol=1e-2)

    print("KERNEL_OK")
</pallas_src>

<mosaic_0001>
module attributes {stable_mosaic.version = 11 : i64} {
  func.func @kernel(%arg0: i32, %arg1: i32, %arg2: memref<16x8x32xbf16, #tpu.memory_space<vmem>>, %arg3: memref<1x8x32xf32, #tpu.memory_space<vmem>>, %arg4: memref<1x8x32xf32, #tpu.memory_space<vmem>>, %arg5: memref<1x32x128xbf16, #tpu.memory_space<vmem>>, %arg6: memref<1x32x128xbf16, #tpu.memory_space<vmem>>, %arg7: memref<1x1x128xf32, #tpu.memory_space<vmem>>, %arg8: memref<16x8x32xbf16, #tpu.memory_space<vmem>>, %arg9: memref<1x8x32xf32, #tpu.memory_space<vmem>>, %arg10: memref<1x8x32xf32, #tpu.memory_space<vmem>>, %arg11: memref<64x128xf32, #tpu.memory_space<vmem>>) attributes {dimension_semantics = [#tpu.dimension_semantics<parallel>, #tpu.dimension_semantics<arbitrary>], iteration_bounds = array<i64: 2, 2>, scalar_prefetch = 0 : i64, scratch_operands = 1 : i64, tpu.core_type = #tpu.core_type<tc>, window_params = [{transform_indices = @transform_0, window_bounds = array<i64: 16, 8, 32>}, {transform_indices = @transform_1, window_bounds = array<i64: 1, 8, 32>}, {transform_indices = @transform_2, window_bounds = array<i64: 1, 8, 32>}, {transform_indices = @transform_3, window_bounds = array<i64: 1, 32, 128>}, {transform_indices = @transform_4, window_bounds = array<i64: 1, 32, 128>}, {transform_indices = @transform_5, window_bounds = array<i64: 1, 1, 128>}, {transform_indices = @transform_6, window_bounds = array<i64: 16, 8, 32>}, {transform_indices = @transform_7, window_bounds = array<i64: 1, 8, 32>}, {transform_indices = @transform_8, window_bounds = array<i64: 1, 8, 32>}]} {
    %c0 = arith.constant 0 : index
    %c0_0 = arith.constant 0 : index
    %c0_1 = arith.constant 0 : index
    %0 = vector.load %arg5[%c0, %c0_0, %c0_1] : memref<1x32x128xbf16, #tpu.memory_space<vmem>>, vector<1x32x128xbf16>
    %1 = vector.shape_cast %0 : vector<1x32x128xbf16> to vector<32x128xbf16>
    %c0_2 = arith.constant 0 : index
    %c0_3 = arith.constant 0 : index
    %c0_4 = arith.constant 0 : index
    %2 = vector.load %arg6[%c0_2, %c0_3, %c0_4] : memref<1x32x128xbf16, #tpu.memory_space<vmem>>, vector<1x32x128xbf16>
    %3 = vector.shape_cast %2 : vector<1x32x128xbf16> to vector<32x128xbf16>
    %c0_5 = arith.constant 0 : index
    %c0_6 = arith.constant 0 : index
    %c0_7 = arith.constant 0 : index
    %4 = vector.load %arg7[%c0_5, %c0_6, %c0_7] : memref<1x1x128xf32, #tpu.memory_space<vmem>>, vector<1x1x128xf32>
    %5 = vector.shape_cast %4 : vector<1x1x128xf32> to vector<1x128xf32>
    %c0_8 = arith.constant 0 : index
    %c0_9 = arith.constant 0 : index
    %c0_10 = arith.constant 0 : index
    %6 = vector.load %arg3[%c0_8, %c0_9, %c0_10] : memref<1x8x32xf32, #tpu.memory_space<vmem>>, vector<1x8x32xf32>
    %7 = vector.shape_cast %6 : vector<1x8x32xf32> to vector<8x32xf32>
    %c0_11 = arith.constant 0 : index
    %c0_12 = arith.constant 0 : index
    %c0_13 = arith.constant 0 : index
    %8 = vector.load %arg4[%c0_11, %c0_12, %c0_13] : memref<1x8x32xf32, #tpu.memory_space<vmem>>, vector<1x8x32xf32>
    %9 = vector.shape_cast %8 : vector<1x8x32xf32> to vector<8x32xf32>
    %c0_i32 = arith.constant 0 : i32
    %c2_i32 = arith.constant 2 : i32
    %10 = arith.addi %c0_i32, %c2_i32 : i32
    %c1_i32 = arith.constant 1 : i32
    %11:2 = scf.for %arg12 = %c0_i32 to %10 step %c1_i32 iter_args(%arg13 = %7, %arg14 = %9) -> (vector<8x32xf32>, vector<8x32xf32>)  : i32 {
      %c8_i32 = arith.constant 8 : i32
      %18 = arith.muli %arg12, %c8_i32 : i32
      %19 = tpu.assume_multiple %18, 8 : i32
      %c0_i32_21 = arith.constant 0 : i32
      %20 = arith.cmpi eq, %arg1, %c0_i32_21 : i32
      %21 = arith.extui %20 : i1 to i32
      %c0_i32_22 = arith.constant 0 : i32
      %22 = arith.cmpi ne, %21, %c0_i32_22 : i32
      scf.if %22 {
        %330 = arith.index_cast %19 : i32 to index
        %c0_92 = arith.constant 0 : index
        %c0_93 = arith.constant 0 : index
        %331 = vector.load %arg2[%330, %c0_92, %c0_93] : memref<16x8x32xbf16, #tpu.memory_space<vmem>>, vector<8x8x32xbf16>
        %332 = vector.shape_cast %331 : vector<8x8x32xbf16> to vector<64x32xbf16>
        %cst_94 = arith.constant dense<0.000000e+00> : vector<64x128xf32>
        %333 = tpu.matmul %332, %1, %cst_94 {dimension_numbers = #tpu.dot_dimension_numbers<[1], [0], [0], [1], [0, 0, 1, 1], [], []>} : vector<64x32xbf16>, vector<32x128xbf16>, vector<64x128xf32> -> vector<64x128xf32>
        %334 = vector.broadcast %5 : vector<1x128xf32> to vector<64x128xf32>
        %335 = arith.addf %333, %334 : vector<64x128xf32>
        %c0_95 = arith.constant 0 : index
        %c0_96 = arith.constant 0 : index
        %336 = vector.load %arg11[%c0_95, %c0_96] : memref<64x128xf32, #tpu.memory_space<vmem>>, vector<64x128xf32>
        tpu.vector_store %arg11[%c0_95, %c0_96], %335 {strides = array<i32>} : memref<64x128xf32, #tpu.memory_space<vmem>>, vector<64x128xf32>,
      } else {
      }
      %c0_i32_23 = arith.constant 0 : i32
      %23 = arith.cmpi sgt, %arg1, %c0_i32_23 : i32
      %24 = arith.extui %23 : i1 to i32
      %c0_i32_24 = arith.constant 0 : i32
      %25 = arith.cmpi ne, %24, %c0_i32_24 : i32
      scf.if %25 {
        %330 = arith.index_cast %19 : i32 to index
        %c0_92 = arith.constant 0 : index
        %c0_93 = arith.constant 0 : index
        %331 = vector.load %arg8[%330, %c0_92, %c0_93] : memref<16x8x32xbf16, #tpu.memory_space<vmem>>, vector<8x8x32xbf16>
        %332 = vector.shape_cast %331 : vector<8x8x32xbf16> to vector<64x32xbf16>
        %cst_94 = arith.constant dense<0.000000e+00> : vector<64x128xf32>
        %333 = tpu.matmul %332, %1, %cst_94 {dimension_numbers = #tpu.dot_dimension_numbers<[1], [0], [0], [1], [0, 0, 1, 1], [], []>} : vector<64x32xbf16>, vector<32x128xbf16>, vector<64x128xf32> -> vector<64x128xf32>
        %334 = vector.broadcast %5 : vector<1x128xf32> to vector<64x128xf32>
        %335 = arith.addf %333, %334 : vector<64x128xf32>
        %c0_95 = arith.constant 0 : index
        %c0_96 = arith.constant 0 : index
        %336 = vector.load %arg11[%c0_95, %c0_96] : memref<64x128xf32, #tpu.memory_space<vmem>>, vector<64x128xf32>
        tpu.vector_store %arg11[%c0_95, %c0_96], %335 {strides = array<i32>} : memref<64x128xf32, #tpu.memory_space<vmem>>, vector<64x128xf32>,
      } else {
      }
      %c0_i32_25 = arith.constant 0 : i32
      %c8_i32_26 = arith.constant 8 : i32
      %26 = arith.muli %c0_i32_25, %c8_i32_26 : i32
      %27 = tpu.assume_multiple %26, 8 : i32
      %28 = arith.index_cast %27 : i32 to index
      %c0_27 = arith.constant 0 : index
      %29 = vector.load %arg11[%28, %c0_27] : memref<64x128xf32, #tpu.memory_space<vmem>>, vector<8x128xf32>
      %30 = arith.truncf %arg13 : vector<8x32xf32> to vector<8x32xbf16>
      %cst = arith.constant dense<0.000000e+00> : vector<8x128xf32>
      %31 = tpu.matmul %30, %3, %cst {dimension_numbers = #tpu.dot_dimension_numbers<[1], [0], [0], [1], [0, 0, 1, 1], [], []>} : vector<8x32xbf16>, vector<32x128xbf16>, vector<8x128xf32> -> vector<8x128xf32>
      %32 = arith.addf %29, %31 : vector<8x128xf32>
      %33 = vector.extract_strided_slice %32 {offsets = [0, 0], sizes = [8, 32], strides = [1, 1]} : vector<8x128xf32> to vector<8x32xf32>
      %34 = arith.negf %33 : vector<8x32xf32>
      %35 = math.exp %34 : vector<8x32xf32>
      %cst_28 = arith.constant 1.000000e+00 : f32
      %36 = vector.broadcast %cst_28 : f32 to vector<8x32xf32>
      %37 = arith.addf %36, %35 : vector<8x32xf32>
      %38 = arith.divf %36, %37 : vector<8x32xf32>
      %39 = vector.extract_strided_slice %32 {offsets = [0, 32], sizes = [8, 32], strides = [1, 1]} : vector<8x128xf32> to vector<8x32xf32>
      %40 = arith.negf %39 : vector<8x32xf32>
      %41 = math.exp %40 : vector<8x32xf32>
      %cst_29 = arith.constant 1.000000e+00 : f32
      %42 = vector.broadcast %cst_29 : f32 to vector<8x32xf32>
      %43 = arith.addf %42, %41 : vector<8x32xf32>
      %44 = arith.divf %42, %43 : vector<8x32xf32>
      %45 = vector.extract_strided_slice %32 {offsets = [0, 64], sizes = [8, 32], strides = [1, 1]} : vector<8x128xf32> to vector<8x32xf32>
      %46 = math.tanh %45 : vector<8x32xf32>
      %47 = vector.extract_strided_slice %32 {offsets = [0, 96], sizes = [8, 32], strides = [1, 1]} : vector<8x128xf32> to vector<8x32xf32>
      %48 = arith.negf %47 : vector<8x32xf32>
      %49 = math.exp %48 : vector<8x32xf32>
      %cst_30 = arith.constant 1.000000e+00 : f32
      %50 = vector.broadcast %cst_30 : f32 to vector<8x32xf32>
      %51 = arith.addf %50, %49 : vector<8x32xf32>
      %52 = arith.divf %50, %51 : vector<8x32xf32>
      %53 = arith.mulf %44, %arg14 : vector<8x32xf32>
      %54 = arith.mulf %38, %46 : vector<8x32xf32>
      %55 = arith.addf %53, %54 : vector<8x32xf32>
      %56 = math.tanh %55 : vector<8x32xf32>
      %57 = arith.mulf %52, %56 : vector<8x32xf32>
      %58 = arith.truncf %57 : vector<8x32xf32> to vector<8x32xbf16>
      %59 = arith.addi %19, %c0_i32_25 : i32
      %60 = arith.index_cast %59 : i32 to index
      %c0_31 = arith.constant 0 : index
      %c0_32 = arith.constant 0 : index
      %61 = vector.load %arg8[%60, %c0_31, %c0_32] : memref<16x8x32xbf16, #tpu.memory_space<vmem>>, vector<1x8x32xbf16>
      %62 = vector.shape_cast %61 : vector<1x8x32xbf16> to vector<8x32xbf16>
      %63 = vector.shape_cast %58 : vector<8x32xbf16> to vector<1x8x32xbf16>
      tpu.vector_store %arg8[%60, %c0_31, %c0_32], %63 {strides = array<i32>} : memref<16x8x32xbf16, #tpu.memory_space<vmem>>, vector<1x8x32xbf16>,
      %c1_i32_33 = arith.constant 1 : i32
      %c8_i32_34 = arith.constant 8 : i32
      %64 = arith.muli %c1_i32_33, %c8_i32_34 : i32
      %65 = tpu.assume_multiple %64, 8 : i32
      %66 = arith.index_cast %65 : i32 to index
      %c0_35 = arith.constant 0 : index
      %67 = vector.load %arg11[%66, %c0_35] : memref<64x128xf32, #tpu.memory_space<vmem>>, vector<8x128xf32>
      %68 = arith.truncf %57 : vector<8x32xf32> to vector<8x32xbf16>
      %cst_36 = arith.constant dense<0.000000e+00> : vector<8x128xf32>
      %69 = tpu.matmul %68, %3, %cst_36 {dimension_numbers = #tpu.dot_dimension_numbers<[1], [0], [0], [1], [0, 0, 1, 1], [], []>} : vector<8x32xbf16>, vector<32x128xbf16>, vector<8x128xf32> -> vector<8x128xf32>
      %70 = arith.addf %67, %69 : vector<8x128xf32>
      %71 = vector.extract_strided_slice %70 {offsets = [0, 0], sizes = [8, 32], strides = [1, 1]} : vector<8x128xf32> to vector<8x32xf32>
      %72 = arith.negf %71 : vector<8x32xf32>
      %73 = math.exp %72 : vector<8x32xf32>
      %cst_37 = arith.constant 1.000000e+00 : f32
      %74 = vector.broadcast %cst_37 : f32 to vector<8x32xf32>
      %75 = arith.addf %74, %73 : vector<8x32xf32>
      %76 = arith.divf %74, %75 : vector<8x32xf32>
      %77 = vector.extract_strided_slice %70 {offsets = [0, 32], sizes = [8, 32], strides = [1, 1]} : vector<8x128xf32> to vector<8x32xf32>
      %78 = arith.negf %77 : vector<8x32xf32>
      %79 = math.exp %78 : vector<8x32xf32>
      %cst_38 = arith.constant 1.000000e+00 : f32
      %80 = vector.broadcast %cst_38 : f32 to vector<8x32xf32>
      %81 = arith.addf %80, %79 : vector<8x32xf32>
      %82 = arith.divf %80, %81 : vector<8x32xf32>
      %83 = vector.extract_strided_slice %70 {offsets = [0, 64], sizes = [8, 32], strides = [1, 1]} : vector<8x128xf32> to vector<8x32xf32>
      %84 = math.tanh %83 : vector<8x32xf32>
      %85 = vector.extract_strided_slice %70 {offsets = [0, 96], sizes = [8, 32], strides = [1, 1]} : vector<8x128xf32> to vector<8x32xf32>
      %86 = arith.negf %85 : vector<8x32xf32>
      %87 = math.exp %86 : vector<8x32xf32>
      %cst_39 = arith.constant 1.000000e+00 : f32
      %88 = vector.broadcast %cst_39 : f32 to vector<8x32xf32>
      %89 = arith.addf %88, %87 : vector<8x32xf32>
      %90 = arith.divf %88, %89 : vector<8x32xf32>
      %91 = arith.mulf %82, %55 : vector<8x32xf32>
      %92 = arith.mulf %76, %84 : vector<8x32xf32>
      %93 = arith.addf %91, %92 : vector<8x32xf32>
      %94 = math.tanh %93 : vector<8x32xf32>
      %95 = arith.mulf %90, %94 : vector<8x32xf32>
      %96 = arith.truncf %95 : vector<8x32xf32> to vector<8x32xbf16>
      %97 = arith.addi %19, %c1_i32_33 : i32
      %98 = arith.index_cast %97 : i32 to index
      %c0_40 = arith.constant 0 : index
      %c0_41 = arith.constant 0 : index
      %99 = vector.load %arg8[%98, %c0_40, %c0_41] : memref<16x8x32xbf16, #tpu.memory_space<vmem>>, vector<1x8x32xbf16>
      %100 = vector.shape_cast %99 : vector<1x8x32xbf16> to vector<8x32xbf16>
      %101 = vector.shape_cast %96 : vector<8x32xbf16> to vector<1x8x32xbf16>
      tpu.vector_store %arg8[%98, %c0_40, %c0_41], %101 {strides = array<i32>} : memref<16x8x32xbf16, #tpu.memory_space<vmem>>, vector<1x8x32xbf16>,
      %c2_i32_42 = arith.constant 2 : i32
      %c8_i32_43 = arith.constant 8 : i32
      %102 = arith.muli %c2_i32_42, %c8_i32_43 : i32
      %103 = tpu.assume_multiple %102, 8 : i32
      %104 = arith.index_cast %103 : i32 to index
      %c0_44 = arith.constant 0 : index
      %105 = vector.load %arg11[%104, %c0_44] : memref<64x128xf32, #tpu.memory_space<vmem>>, vector<8x128xf32>
      %106 = arith.truncf %95 : vector<8x32xf32> to vector<8x32xbf16>
      %cst_45 = arith.constant dense<0.000000e+00> : vector<8x128xf32>
      %107 = tpu.matmul %106, %3, %cst_45 {dimension_numbers = #tpu.dot_dimension_numbers<[1], [0], [0], [1], [0, 0, 1, 1], [], []>} : vector<8x32xbf16>, vector<32x128xbf16>, vector<8x128xf32> -> vector<8x128xf32>
      %108 = arith.addf %105, %107 : vector<8x128xf32>
      %109 = vector.extract_strided_slice %108 {offsets = [0, 0], sizes = [8, 32], strides = [1, 1]} : vector<8x128xf32> to vector<8x32xf32>
      %110 = arith.negf %109 : vector<8x32xf32>
      %111 = math.exp %110 : vector<8x32xf32>
      %cst_46 = arith.constant 1.000000e+00 : f32
      %112 = vector.broadcast %cst_46 : f32 to vector<8x32xf32>
      %113 = arith.addf %112, %111 : vector<8x32xf32>
      %114 = arith.divf %112, %113 : vector<8x32xf32>
      %115 = vector.extract_strided_slice %108 {offsets = [0, 32], sizes = [8, 32], strides = [1, 1]} : vector<8x128xf32> to vector<8x32xf32>
      %116 = arith.negf %115 : vector<8x32xf32>
      %117 = math.exp %116 : vector<8x32xf32>
      %cst_47 = arith.constant 1.000000e+00 : f32
      %118 = vector.broadcast %cst_47 : f32 to vector<8x32xf32>
      %119 = arith.addf %118, %117 : vector<8x32xf32>
      %120 = arith.divf %118, %119 : vector<8x32xf32>
      %121 = vector.extract_strided_slice %108 {offsets = [0, 64], sizes = [8, 32], strides = [1, 1]} : vector<8x128xf32> to vector<8x32xf32>
      %122 = math.tanh %121 : vector<8x32xf32>
      %123 = vector.extract_strided_slice %108 {offsets = [0, 96], sizes = [8, 32], strides = [1, 1]} : vector<8x128xf32> to vector<8x32xf32>
      %124 = arith.negf %123 : vector<8x32xf32>
      %125 = math.exp %124 : vector<8x32xf32>
      %cst_48 = arith.constant 1.000000e+00 : f32
      %126 = vector.broadcast %cst_48 : f32 to vector<8x32xf32>
      %127 = arith.addf %126, %125 : vector<8x32xf32>
      %128 = arith.divf %126, %127 : vector<8x32xf32>
      %129 = arith.mulf %120, %93 : vector<8x32xf32>
      %130 = arith.mulf %114, %122 : vector<8x32xf32>
      %131 = arith.addf %129, %130 : vector<8x32xf32>
      %132 = math.tanh %131 : vector<8x32xf32>
      %133 = arith.mulf %128, %132 : vector<8x32xf32>
      %134 = arith.truncf %133 : vector<8x32xf32> to vector<8x32xbf16>
      %135 = arith.addi %19, %c2_i32_42 : i32
      %136 = arith.index_cast %135 : i32 to index
      %c0_49 = arith.constant 0 : index
      %c0_50 = arith.constant 0 : index
      %137 = vector.load %arg8[%136, %c0_49, %c0_50] : memref<16x8x32xbf16, #tpu.memory_space<vmem>>, vector<1x8x32xbf16>
      %138 = vector.shape_cast %137 : vector<1x8x32xbf16> to vector<8x32xbf16>
      %139 = vector.shape_cast %134 : vector<8x32xbf16> to vector<1x8x32xbf16>
      tpu.vector_store %arg8[%136, %c0_49, %c0_50], %139 {strides = array<i32>} : memref<16x8x32xbf16, #tpu.memory_space<vmem>>, vector<1x8x32xbf16>,
      %c3_i32 = arith.constant 3 : i32
      %c8_i32_51 = arith.constant 8 : i32
      %140 = arith.muli %c3_i32, %c8_i32_51 : i32
      %141 = tpu.assume_multiple %140, 8 : i32
      %142 = arith.index_cast %141 : i32 to index
      %c0_52 = arith.constant 0 : index
      %143 = vector.load %arg11[%142, %c0_52] : memref<64x128xf32, #tpu.memory_space<vmem>>, vector<8x128xf32>
      %144 = arith.truncf %133 : vector<8x32xf32> to vector<8x32xbf16>
      %cst_53 = arith.constant dense<0.000000e+00> : vector<8x128xf32>
      %145 = tpu.matmul %144, %3, %cst_53 {dimension_numbers = #tpu.dot_dimension_numbers<[1], [0], [0], [1], [0, 0, 1, 1], [], []>} : vector<8x32xbf16>, vector<32x128xbf16>, vector<8x128xf32> -> vector<8x128xf32>
      %146 = arith.addf %143, %145 : vector<8x128xf32>
      %147 = vector.extract_strided_slice %146 {offsets = [0, 0], sizes = [8, 32], strides = [1, 1]} : vector<8x128xf32> to vector<8x32xf32>
      %148 = arith.negf %147 : vector<8x32xf32>
      %149 = math.exp %148 : vector<8x32xf32>
      %cst_54 = arith.constant 1.000000e+00 : f32
      %150 = vector.broadcast %cst_54 : f32 to vector<8x32xf32>
      %151 = arith.addf %150, %149 : vector<8x32xf32>
      %152 = arith.divf %150, %151 : vector<8x32xf32>
      %153 = vector.extract_strided_slice %146 {offsets = [0, 32], sizes = [8, 32], strides = [1, 1]} : vector<8x128xf32> to vector<8x32xf32>
      %154 = arith.negf %153 : vector<8x32xf32>
      %155 = math.exp %154 : vector<8x32xf32>
      %cst_55 = arith.constant 1.000000e+00 : f32
      %156 = vector.broadcast %cst_55 : f32 to vector<8x32xf32>
      %157 = arith.addf %156, %155 : vector<8x32xf32>
      %158 = arith.divf %156, %157 : vector<8x32xf32>
      %159 = vector.extract_strided_slice %146 {offsets = [0, 64], sizes = [8, 32], strides = [1, 1]} : vector<8x128xf32> to vector<8x32xf32>
      %160 = math.tanh %159 : vector<8x32xf32>
      %161 = vector.extract_strided_slice %146 {offsets = [0, 96], sizes = [8, 32], strides = [1, 1]} : vector<8x128xf32> to vector<8x32xf32>
      %162 = arith.negf %161 : vector<8x32xf32>
      %163 = math.exp %162 : vector<8x32xf32>
      %cst_56 = arith.constant 1.000000e+00 : f32
      %164 = vector.broadcast %cst_56 : f32 to vector<8x32xf32>
      %165 = arith.addf %164, %163 : vector<8x32xf32>
      %166 = arith.divf %164, %165 : vector<8x32xf32>
      %167 = arith.mulf %158, %131 : vector<8x32xf32>
      %168 = arith.mulf %152, %160 : vector<8x32xf32>
      %169 = arith.addf %167, %168 : vector<8x32xf32>
      %170 = math.tanh %169 : vector<8x32xf32>
      %171 = arith.mulf %166, %170 : vector<8x32xf32>
      %172 = arith.truncf %171 : vector<8x32xf32> to vector<8x32xbf16>
      %173 = arith.addi %19, %c3_i32 : i32
      %174 = arith.index_cast %173 : i32 to index
      %c0_57 = arith.constant 0 : index
      %c0_58 = arith.constant 0 : index
      %175 = vector.load %arg8[%174, %c0_57, %c0_58] : memref<16x8x32xbf16, #tpu.memory_space<vmem>>, vector<1x8x32xbf16>
      %176 = vector.shape_cast %175 : vector<1x8x32xbf16> to vector<8x32xbf16>
      %177 = vector.shape_cast %172 : vector<8x32xbf16> to vector<1x8x32xbf16>
      tpu.vector_store %arg8[%174, %c0_57, %c0_58], %177 {strides = array<i32>} : memref<16x8x32xbf16, #tpu.memory_space<vmem>>, vector<1x8x32xbf16>,
      %c4_i32 = arith.constant 4 : i32
      %c8_i32_59 = arith.constant 8 : i32
      %178 = arith.muli %c4_i32, %c8_i32_59 : i32
      %179 = tpu.assume_multiple %178, 8 : i32
      %180 = arith.index_cast %179 : i32 to index
      %c0_60 = arith.constant 0 : index
      %181 = vector.load %arg11[%180, %c0_60] : memref<64x128xf32, #tpu.memory_space<vmem>>, vector<8x128xf32>
      %182 = arith.truncf %171 : vector<8x32xf32> to vector<8x32xbf16>
      %cst_61 = arith.constant dense<0.000000e+00> : vector<8x128xf32>
      %183 = tpu.matmul %182, %3, %cst_61 {dimension_numbers = #tpu.dot_dimension_numbers<[1], [0], [0], [1], [0, 0, 1, 1], [], []>} : vector<8x32xbf16>, vector<32x128xbf16>, vector<8x128xf32> -> vector<8x128xf32>
      %184 = arith.addf %181, %183 : vector<8x128xf32>
      %185 = vector.extract_strided_slice %184 {offsets = [0, 0], sizes = [8, 32], strides = [1, 1]} : vector<8x128xf32> to vector<8x32xf32>
      %186 = arith.negf %185 : vector<8x32xf32>
      %187 = math.exp %186 : vector<8x32xf32>
      %cst_62 = arith.constant 1.000000e+00 : f32
      %188 = vector.broadcast %cst_62 : f32 to vector<8x32xf32>
      %189 = arith.addf %188, %187 : vector<8x32xf32>
      %190 = arith.divf %188, %189 : vector<8x32xf32>
      %191 = vector.extract_strided_slice %184 {offsets = [0, 32], sizes = [8, 32], strides = [1, 1]} : vector<8x128xf32> to vector<8x32xf32>
      %192 = arith.negf %191 : vector<8x32xf32>
      %193 = math.exp %192 : vector<8x32xf32>
      %cst_63 = arith.constant 1.000000e+00 : f32
      %194 = vector.broadcast %cst_63 : f32 to vector<8x32xf32>
      %195 = arith.addf %194, %193 : vector<8x32xf32>
      %196 = arith.divf %194, %195 : vector<8x32xf32>
      %197 = vector.extract_strided_slice %184 {offsets = [0, 64], sizes = [8, 32], strides = [1, 1]} : vector<8x128xf32> to vector<8x32xf32>
      %198 = math.tanh %197 : vector<8x32xf32>
      %199 = vector.extract_strided_slice %184 {offsets = [0, 96], sizes = [8, 32], strides = [1, 1]} : vector<8x128xf32> to vector<8x32xf32>
      %200 = arith.negf %199 : vector<8x32xf32>
      %201 = math.exp %200 : vector<8x32xf32>
      %cst_64 = arith.constant 1.000000e+00 : f32
      %202 = vector.broadcast %cst_64 : f32 to vector<8x32xf32>
      %203 = arith.addf %202, %201 : vector<8x32xf32>
      %204 = arith.divf %202, %203 : vector<8x32xf32>
      %205 = arith.mulf %196, %169 : vector<8x32xf32>
      %206 = arith.mulf %190, %198 : vector<8x32xf32>
      %207 = arith.addf %205, %206 : vector<8x32xf32>
      %208 = math.tanh %207 : vector<8x32xf32>
      %209 = arith.mulf %204, %208 : vector<8x32xf32>
      %210 = arith.truncf %209 : vector<8x32xf32> to vector<8x32xbf16>
      %211 = arith.addi %19, %c4_i32 : i32
      %212 = arith.index_cast %211 : i32 to index
      %c0_65 = arith.constant 0 : index
      %c0_66 = arith.constant 0 : index
      %213 = vector.load %arg8[%212, %c0_65, %c0_66] : memref<16x8x32xbf16, #tpu.memory_space<vmem>>, vector<1x8x32xbf16>
      %214 = vector.shape_cast %213 : vector<1x8x32xbf16> to vector<8x32xbf16>
      %215 = vector.shape_cast %210 : vector<8x32xbf16> to vector<1x8x32xbf16>
      tpu.vector_store %arg8[%212, %c0_65, %c0_66], %215 {strides = array<i32>} : memref<16x8x32xbf16, #tpu.memory_space<vmem>>, vector<1x8x32xbf16>,
      %c5_i32 = arith.constant 5 : i32
      %c8_i32_67 = arith.constant 8 : i32
      %216 = arith.muli %c5_i32, %c8_i32_67 : i32
      %217 = tpu.assume_multiple %216, 8 : i32
      %218 = arith.index_cast %217 : i32 to index
      %c0_68 = arith.constant 0 : index
      %219 = vector.load %arg11[%218, %c0_68] : memref<64x128xf32, #tpu.memory_space<vmem>>, vector<8x128xf32>
      %220 = arith.truncf %209 : vector<8x32xf32> to vector<8x32xbf16>
      %cst_69 = arith.constant dense<0.000000e+00> : vector<8x128xf32>
      %221 = tpu.matmul %220, %3, %cst_69 {dimension_numbers = #tpu.dot_dimension_numbers<[1], [0], [0], [1], [0, 0, 1, 1], [], []>} : vector<8x32xbf16>, vector<32x128xbf16>, vector<8x128xf32> -> vector<8x128xf32>
      %222 = arith.addf %219, %221 : vector<8x128xf32>
      %223 = vector.extract_strided_slice %222 {offsets = [0, 0], sizes = [8, 32], strides = [1, 1]} : vector<8x128xf32> to vector<8x32xf32>
      %224 = arith.negf %223 : vector<8x32xf32>
      %225 = math.exp %224 : vector<8x32xf32>
      %cst_70 = arith.constant 1.000000e+00 : f32
      %226 = vector.broadcast %cst_70 : f32 to vector<8x32xf32>
      %227 = arith.addf %226, %225 : vector<8x32xf32>
      %228 = arith.divf %226, %227 : vector<8x32xf32>
      %229 = vector.extract_strided_slice %222 {offsets = [0, 32], sizes = [8, 32], strides = [1, 1]} : vector<8x128xf32> to vector<8x32xf32>
      %230 = arith.negf %229 : vector<8x32xf32>
      %231 = math.exp %230 : vector<8x32xf32>
      %cst_71 = arith.constant 1.000000e+00 : f32
      %232 = vector.broadcast %cst_71 : f32 to vector<8x32xf32>
      %233 = arith.addf %232, %231 : vector<8x32xf32>
      %234 = arith.divf %232, %233 : vector<8x32xf32>
      %235 = vector.extract_strided_slice %222 {offsets = [0, 64], sizes = [8, 32], strides = [1, 1]} : vector<8x128xf32> to vector<8x32xf32>
      %236 = math.tanh %235 : vector<8x32xf32>
      %237 = vector.extract_strided_slice %222 {offsets = [0, 96], sizes = [8, 32], strides = [1, 1]} : vector<8x128xf32> to vector<8x32xf32>
      %238 = arith.negf %237 : vector<8x32xf32>
      %239 = math.exp %238 : vector<8x32xf32>
      %cst_72 = arith.constant 1.000000e+00 : f32
      %240 = vector.broadcast %cst_72 : f32 to vector<8x32xf32>
      %241 = arith.addf %240, %239 : vector<8x32xf32>
      %242 = arith.divf %240, %241 : vector<8x32xf32>
      %243 = arith.mulf %234, %207 : vector<8x32xf32>
      %244 = arith.mulf %228, %236 : vector<8x32xf32>
      %245 = arith.addf %243, %244 : vector<8x32xf32>
      %246 = math.tanh %245 : vector<8x32xf32>
      %247 = arith.mulf %242, %246 : vector<8x32xf32>
      %248 = arith.truncf %247 : vector<8x32xf32> to vector<8x32xbf16>
      %249 = arith.addi %19, %c5_i32 : i32
      %250 = arith.index_cast %249 : i32 to index
      %c0_73 = arith.constant 0 : index
      %c0_74 = arith.constant 0 : index
      %251 = vector.load %arg8[%250, %c0_73, %c0_74] : memref<16x8x32xbf16, #tpu.memory_space<vmem>>, vector<1x8x32xbf16>
      %252 = vector.shape_cast %251 : vector<1x8x32xbf16> to vector<8x32xbf16>
      %253 = vector.shape_cast %248 : vector<8x32xbf16> to vector<1x8x32xbf16>
      tpu.vector_store %arg8[%250, %c0_73, %c0_74], %253 {strides = array<i32>} : memref<16x8x32xbf16, #tpu.memory_space<vmem>>, vector<1x8x32xbf16>,
      %c6_i32 = arith.constant 6 : i32
      %c8_i32_75 = arith.constant 8 : i32
      %254 = arith.muli %c6_i32, %c8_i32_75 : i32
      %255 = tpu.assume_multiple %254, 8 : i32
      %256 = arith.index_cast %255 : i32 to index
      %c0_76 = arith.constant 0 : index
      %257 = vector.load %arg11[%256, %c0_76] : memref<64x128xf32, #tpu.memory_space<vmem>>, vector<8x128xf32>
      %258 = arith.truncf %247 : vector<8x32xf32> to vector<8x32xbf16>
      %cst_77 = arith.constant dense<0.000000e+00> : vector<8x128xf32>
      %259 = tpu.matmul %258, %3, %cst_77 {dimension_numbers = #tpu.dot_dimension_numbers<[1], [0], [0], [1], [0, 0, 1, 1], [], []>} : vector<8x32xbf16>, vector<32x128xbf16>, vector<8x128xf32> -> vector<8x128xf32>
      %260 = arith.addf %257, %259 : vector<8x128xf32>
      %261 = vector.extract_strided_slice %260 {offsets = [0, 0], sizes = [8, 32], strides = [1, 1]} : vector<8x128xf32> to vector<8x32xf32>
      %262 = arith.negf %261 : vector<8x32xf32>
      %263 = math.exp %262 : vector<8x32xf32>
      %cst_78 = arith.constant 1.000000e+00 : f32
      %264 = vector.broadcast %cst_78 : f32 to vector<8x32xf32>
      %265 = arith.addf %264, %263 : vector<8x32xf32>
      %266 = arith.divf %264, %265 : vector<8x32xf32>
      %267 = vector.extract_strided_slice %260 {offsets = [0, 32], sizes = [8, 32], strides = [1, 1]} : vector<8x128xf32> to vector<8x32xf32>
      %268 = arith.negf %267 : vector<8x32xf32>
      %269 = math.exp %268 : vector<8x32xf32>
      %cst_79 = arith.constant 1.000000e+00 : f32
      %270 = vector.broadcast %cst_79 : f32 to vector<8x32xf32>
      %271 = arith.addf %270, %269 : vector<8x32xf32>
      %272 = arith.divf %270, %271 : vector<8x32xf32>
      %273 = vector.extract_strided_slice %260 {offsets = [0, 64], sizes = [8, 32], strides = [1, 1]} : vector<8x128xf32> to vector<8x32xf32>
      %274 = math.tanh %273 : vector<8x32xf32>
      %275 = vector.extract_strided_slice %260 {offsets = [0, 96], sizes = [8, 32], strides = [1, 1]} : vector<8x128xf32> to vector<8x32xf32>
      %276 = arith.negf %275 : vector<8x32xf32>
      %277 = math.exp %276 : vector<8x32xf32>
      %cst_80 = arith.constant 1.000000e+00 : f32
      %278 = vector.broadcast %cst_80 : f32 to vector<8x32xf32>
      %279 = arith.addf %278, %277 : vector<8x32xf32>
      %280 = arith.divf %278, %279 : vector<8x32xf32>
      %281 = arith.mulf %272, %245 : vector<8x32xf32>
      %282 = arith.mulf %266, %274 : vector<8x32xf32>
      %283 = arith.addf %281, %282 : vector<8x32xf32>
      %284 = math.tanh %283 : vector<8x32xf32>
      %285 = arith.mulf %280, %284 : vector<8x32xf32>
      %286 = arith.truncf %285 : vector<8x32xf32> to vector<8x32xbf16>
      %287 = arith.addi %19, %c6_i32 : i32
      %288 = arith.index_cast %287 : i32 to index
      %c0_81 = arith.constant 0 : index
      %c0_82 = arith.constant 0 : index
      %289 = vector.load %arg8[%288, %c0_81, %c0_82] : memref<16x8x32xbf16, #tpu.memory_space<vmem>>, vector<1x8x32xbf16>
      %290 = vector.shape_cast %289 : vector<1x8x32xbf16> to vector<8x32xbf16>
      %291 = vector.shape_cast %286 : vector<8x32xbf16> to vector<1x8x32xbf16>
      tpu.vector_store %arg8[%288, %c0_81, %c0_82], %291 {strides = array<i32>} : memref<16x8x32xbf16, #tpu.memory_space<vmem>>, vector<1x8x32xbf16>,
      %c7_i32 = arith.constant 7 : i32
      %c8_i32_83 = arith.constant 8 : i32
      %292 = arith.muli %c7_i32, %c8_i32_83 : i32
      %293 = tpu.assume_multiple %292, 8 : i32
      %294 = arith.index_cast %293 : i32 to index
      %c0_84 = arith.constant 0 : index
      %295 = vector.load %arg11[%294, %c0_84] : memref<64x128xf32, #tpu.memory_space<vmem>>, vector<8x128xf32>
      %296 = arith.truncf %285 : vector<8x32xf32> to vector<8x32xbf16>
      %cst_85 = arith.constant dense<0.000000e+00> : vector<8x128xf32>
      %297 = tpu.matmul %296, %3, %cst_85 {dimension_numbers = #tpu.dot_dimension_numbers<[1], [0], [0], [1], [0, 0, 1, 1], [], []>} : vector<8x32xbf16>, vector<32x128xbf16>, vector<8x128xf32> -> vector<8x128xf32>
      %298 = arith.addf %295, %297 : vector<8x128xf32>
      %299 = vector.extract_strided_slice %298 {offsets = [0, 0], sizes = [8, 32], strides = [1, 1]} : vector<8x128xf32> to vector<8x32xf32>
      %300 = arith.negf %299 : vector<8x32xf32>
      %301 = math.exp %300 : vector<8x32xf32>
      %cst_86 = arith.constant 1.000000e+00 : f32
      %302 = vector.broadcast %cst_86 : f32 to vector<8x32xf32>
      %303 = arith.addf %302, %301 : vector<8x32xf32>
      %304 = arith.divf %302, %303 : vector<8x32xf32>
      %305 = vector.extract_strided_slice %298 {offsets = [0, 32], sizes = [8, 32], strides = [1, 1]} : vector<8x128xf32> to vector<8x32xf32>
      %306 = arith.negf %305 : vector<8x32xf32>
      %307 = math.exp %306 : vector<8x32xf32>
      %cst_87 = arith.constant 1.000000e+00 : f32
      %308 = vector.broadcast %cst_87 : f32 to vector<8x32xf32>
      %309 = arith.addf %308, %307 : vector<8x32xf32>
      %310 = arith.divf %308, %309 : vector<8x32xf32>
      %311 = vector.extract_strided_slice %298 {offsets = [0, 64], sizes = [8, 32], strides = [1, 1]} : vector<8x128xf32> to vector<8x32xf32>
      %312 = math.tanh %311 : vector<8x32xf32>
      %313 = vector.extract_strided_slice %298 {offsets = [0, 96], sizes = [8, 32], strides = [1, 1]} : vector<8x128xf32> to vector<8x32xf32>
      %314 = arith.negf %313 : vector<8x32xf32>
      %315 = math.exp %314 : vector<8x32xf32>
      %cst_88 = arith.constant 1.000000e+00 : f32
      %316 = vector.broadcast %cst_88 : f32 to vector<8x32xf32>
      %317 = arith.addf %316, %315 : vector<8x32xf32>
      %318 = arith.divf %316, %317 : vector<8x32xf32>
      %319 = arith.mulf %310, %283 : vector<8x32xf32>
      %320 = arith.mulf %304, %312 : vector<8x32xf32>
      %321 = arith.addf %319, %320 : vector<8x32xf32>
      %322 = math.tanh %321 : vector<8x32xf32>
      %323 = arith.mulf %318, %322 : vector<8x32xf32>
      %324 = arith.truncf %323 : vector<8x32xf32> to vector<8x32xbf16>
      %325 = arith.addi %19, %c7_i32 : i32
      %326 = arith.index_cast %325 : i32 to index
      %c0_89 = arith.constant 0 : index
      %c0_90 = arith.constant 0 : index
      %327 = vector.load %arg8[%326, %c0_89, %c0_90] : memref<16x8x32xbf16, #tpu.memory_space<vmem>>, vector<1x8x32xbf16>
      %328 = vector.shape_cast %327 : vector<1x8x32xbf16> to vector<8x32xbf16>
      %329 = vector.shape_cast %324 : vector<8x32xbf16> to vector<1x8x32xbf16>
      tpu.vector_store %arg8[%326, %c0_89, %c0_90], %329 {strides = array<i32>} : memref<16x8x32xbf16, #tpu.memory_space<vmem>>, vector<1x8x32xbf16>,
      %c8_i32_91 = arith.constant 8 : i32
      scf.yield %323, %321 : vector<8x32xf32>, vector<8x32xf32>
    }
    %c2_i32_14 = arith.constant 2 : i32
    %c0_15 = arith.constant 0 : index
    %c0_16 = arith.constant 0 : index
    %c0_17 = arith.constant 0 : index
    %12 = vector.load %arg9[%c0_15, %c0_16, %c0_17] : memref<1x8x32xf32, #tpu.memory_space<vmem>>, vector<1x8x32xf32>
    %13 = vector.shape_cast %12 : vector<1x8x32xf32> to vector<8x32xf32>
    %14 = vector.shape_cast %11#0 : vector<8x32xf32> to vector<1x8x32xf32>
    tpu.vector_store %arg9[%c0_15, %c0_16, %c0_17], %14 {strides = array<i32>} : memref<1x8x32xf32, #tpu.memory_space<vmem>>, vector<1x8x32xf32>,
    %c0_18 = arith.constant 0 : index
    %c0_19 = arith.constant 0 : index
    %c0_20 = arith.constant 0 : index
    %15 = vector.load %arg10[%c0_18, %c0_19, %c0_20] : memref<1x8x32xf32, #tpu.memory_space<vmem>>, vector<1x8x32xf32>
    %16 = vector.shape_cast %15 : vector<1x8x32xf32> to vector<8x32xf32>
    %17 = vector.shape_cast %11#1 : vector<8x32xf32> to vector<1x8x32xf32>
    tpu.vector_store %arg10[%c0_18, %c0_19, %c0_20], %17 {strides = array<i32>} : memref<1x8x32xf32, #tpu.memory_space<vmem>>, vector<1x8x32xf32>,
    return
  }
  func.func @transform_0(%arg0: i32, %arg1: i32) -> (i32, i32, i32) {
    %c0_i32 = arith.constant 0 : i32
    %c0_i32_0 = arith.constant 0 : i32
    %c0_i32_1 = arith.constant 0 : i32
    return %c0_i32, %arg0, %c0_i32_0 : i32, i32, i32
  }
  func.func @transform_1(%arg0: i32, %arg1: i32) -> (i32, i32, i32) {
    %c0_i32 = arith.constant 0 : i32
    %c0_i32_0 = arith.constant 0 : i32
    return %arg1, %arg0, %c0_i32 : i32, i32, i32
  }
  func.func @transform_2(%arg0: i32, %arg1: i32) -> (i32, i32, i32) {
    %c0_i32 = arith.constant 0 : i32
    %c0_i32_0 = arith.constant 0 : i32
    return %arg1, %arg0, %c0_i32 : i32, i32, i32
  }
  func.func @transform_3(%arg0: i32, %arg1: i32) -> (i32, i32, i32) {
    %c0_i32 = arith.constant 0 : i32
    %c0_i32_0 = arith.constant 0 : i32
    %c0_i32_1 = arith.constant 0 : i32
    return %arg1, %c0_i32, %c0_i32_0 : i32, i32, i32
  }
  func.func @transform_4(%arg0: i32, %arg1: i32) -> (i32, i32, i32) {
    %c0_i32 = arith.constant 0 : i32
    %c0_i32_0 = arith.constant 0 : i32
    %c0_i32_1 = arith.constant 0 : i32
    return %arg1, %c0_i32, %c0_i32_0 : i32, i32, i32
  }
  func.func @transform_5(%arg0: i32, %arg1: i32) -> (i32, i32, i32) {
    %c0_i32 = arith.constant 0 : i32
    %c0_i32_0 = arith.constant 0 : i32
    %c0_i32_1 = arith.constant 0 : i32
    return %arg1, %c0_i32, %c0_i32_0 : i32, i32, i32
  }
  func.func @transform_6(%arg0: i32, %arg1: i32) -> (i32, i32, i32) {
    %c0_i32 = arith.constant 0 : i32
    %c0_i32_0 = arith.constant 0 : i32
    %c0_i32_1 = arith.constant 0 : i32
    return %c0_i32, %arg0, %c0_i32_0 : i32, i32, i32
  }
  func.func @transform_7(%arg0: i32, %arg1: i32) -> (i32, i32, i32) {
    %c0_i32 = arith.constant 0 : i32
    %c0_i32_0 = arith.constant 0 : i32
    return %arg1, %arg0, %c0_i32 : i32, i32, i32
  }
  func.func @transform_8(%arg0: i32, %arg1: i32) -> (i32, i32, i32) {
    %c0_i32 = arith.constant 0 : i32
    %c0_i32_0 = arith.constant 0 : i32
    return %arg1, %arg0, %c0_i32 : i32, i32, i32
  }
}

module attributes {stable_mosaic.version = 11 : i64} {
  func.func @_fc_kernel(%arg0: i32, %arg1: i32, %arg2: memref<128x32xbf16, #tpu.memory_space<vmem>>, %arg3: memref<32x512xbf16, #tpu.memory_space<vmem>>, %arg4: memref<1x512xf32, #tpu.memory_space<vmem>>, %arg5: memref<128x512xf32, #tpu.memory_space<vmem>>) attributes {dimension_semantics = [#tpu.dimension_semantics<parallel>, #tpu.dimension_semantics<parallel>], iteration_bounds = array<i64: 2, 2>, scalar_prefetch = 0 : i64, scratch_operands = 0 : i64, tpu.core_type = #tpu.core_type<tc>, window_params = [{transform_indices = @transform_0, window_bounds = array<i64: 128, 32>}, {transform_indices = @transform_1, window_bounds = array<i64: 32, 512>}, {transform_indices = @transform_2, window_bounds = array<i64: 1, 512>}, {transform_indices = @transform_3, window_bounds = array<i64: 128, 512>}]} {
    %c0 = arith.constant 0 : index
    %c0_0 = arith.constant 0 : index
    %0 = vector.load %arg2[%c0, %c0_0] : memref<128x32xbf16, #tpu.memory_space<vmem>>, vector<128x32xbf16>
    %c0_1 = arith.constant 0 : index
    %c0_2 = arith.constant 0 : index
    %1 = vector.load %arg3[%c0_1, %c0_2] : memref<32x512xbf16, #tpu.memory_space<vmem>>, vector<32x512xbf16>
    %cst = arith.constant dense<0.000000e+00> : vector<128x512xf32>
    %2 = tpu.matmul %0, %1, %cst {dimension_numbers = #tpu.dot_dimension_numbers<[1], [0], [0], [1], [0, 0, 1, 1], [], []>} : vector<128x32xbf16>, vector<32x512xbf16>, vector<128x512xf32> -> vector<128x512xf32>
    %c0_3 = arith.constant 0 : index
    %c0_4 = arith.constant 0 : index
    %3 = vector.load %arg4[%c0_3, %c0_4] : memref<1x512xf32, #tpu.memory_space<vmem>>, vector<1x512xf32>
    %4 = vector.broadcast %3 : vector<1x512xf32> to vector<128x512xf32>
    %5 = arith.addf %2, %4 : vector<128x512xf32>
    %c0_5 = arith.constant 0 : index
    %c0_6 = arith.constant 0 : index
    %6 = vector.load %arg5[%c0_5, %c0_6] : memref<128x512xf32, #tpu.memory_space<vmem>>, vector<128x512xf32>
    tpu.vector_store %arg5[%c0_5, %c0_6], %5 {strides = array<i32>} : memref<128x512xf32, #tpu.memory_space<vmem>>, vector<128x512xf32>,
    return
  }
  func.func @transform_0(%arg0: i32, %arg1: i32) -> (i32, i32) {
    %c0_i32 = arith.constant 0 : i32
    %c0_i32_0 = arith.constant 0 : i32
    return %arg1, %c0_i32 : i32, i32
  }
  func.func @transform_1(%arg0: i32, %arg1: i32) -> (i32, i32) {
    %c0_i32 = arith.constant 0 : i32
    %c0_i32_0 = arith.constant 0 : i32
    return %c0_i32, %arg0 : i32, i32
  }
  func.func @transform_2(%arg0: i32, %arg1: i32) -> (i32, i32) {
    %c0_i32 = arith.constant 0 : i32
    %c0_i32_0 = arith.constant 0 : i32
    return %c0_i32, %arg0 : i32, i32
  }
  func.func @transform_3(%arg0: i32, %arg1: i32) -> (i32, i32) {
    %c0_i32 = arith.constant 0 : i32
    return %arg1, %arg0 : i32, i32
  }
}

</mosaic_0001>

<bundles_post_ra>
// kernel: lstm_generator_forward.3
= control target key start
LH: loop header
LB: loop body
LE: loop exit
PB: predicated region body
PF: predicated region fallthrough
CT: control target
= control target key end

     0   :  { %8 = vsyncpa [#allocation4], 0  ;;  %s1475_s0 = inlined_call_operand.vmem [shape: bf16[256,32], index: 0, kind: input, shape index: {}]   ;;  %s1476_s1 = inlined_call_operand.vmem [shape: bf16[32,1024], index: 1, kind: input, shape index: {}]   ;;  %s1477_s2 = inlined_call_operand.vmem [shape: f32[1,1024], index: 2, kind: input, shape index: {}]   ;;  %s1478_s3 = inlined_call_operand.hbm [shape: f32[256,1024], index: 3, kind: output, shape index: {}]  }
   0x1   :  { %10 = vsyncpa [#allocation4 + $0x1], 0  ;;  %s1125_s12 = smov 0   ;;  %s1127_s13 = smov 0  }
   0x2   :  { %s1129_s14 = smov 0   ;;  %s1131_s15 = smov 0  }
   0x3   :  { %s1133_s16 = smov 0   ;;  %s1135_s17 = smov 0  }
   0x4   :  { %s1137_s18 = smov 0   ;;  %s1139_s19 = smov 0  }
   0x5   :  { %s1141_s20 = smov 0   ;;  %s1143_s21 = smov 0  }
   0x6 LB: > { %s823_s22 = sadd.s32 4294967295, %s1098_s21   ;;  %s824_s23 = sadd.s32 4294967294, %s1098_s21   ;;  %s1098_s21 = sphi %s1143_s21, %s16_s21   ;;  %s1094_s20 = sphi %s1141_s20, %s1490_s20   ;;  %s1090_s19 = sphi %s1139_s19, %s1489_s19   ;;  %s1086_s18 = sphi %s1137_s18, %s1488_s18   ;;  %s1082_s17 = sphi %s1135_s17, %s1487_s17   ;;  %s1078_s16 = sphi %s1133_s16, %s1486_s16   ;;  %s1074_s15 = sphi %s1131_s15, %s1485_s15   ;;  %s1070_s14 = sphi %s1129_s14, %s1484_s14   ;;  %s1066_s13 = sphi %s1127_s13, %s1483_s13   ;;  %s1062_s12 = sphi %s1125_s12, %s1482_s12  }
   0x7   : > { %s25_s24 = sadd.s32 1, %s1090_s19  ;;  %s28_s25 = sadd.s32 1, %s1094_s20 }
   0x8   : > { %p26_p0 = scmp.ge.s32.totalorder %s25_s24, 2  ;;  %s61_s26 = sadd.s32 1, %s1078_s16 }
   0x9   : > { %p68_p1 = scmp.ne.s32.totalorder %s1078_s16, %s1074_s15  ;;  %p69_p2 = scmp.eq.s32.totalorder %s1098_s21, 0 }
   0xa   : > { %s1492_s24 = smov (%p26_p0, %s25_s24), 0  ;;  %s1494_s25 = smov (!%p26_p0, %s28_s25), %s1094_s20 }
   0xb   : > { %p1186_p3 = por %p69_p2, %p68_p1  ;;  %s110_s28 = ssub.s32 %s1090_s19, %s1492_s24 }
   0xc   : > { %p30_p4 = scmp.ge.s32.totalorder %s1494_s25, 2  ;;  %s115_s29 = sadd.s32 1, %s1070_s14 }
   0xd   : > { %p125_p5 = scmp.ne.s32.totalorder %s1070_s14, %s1066_s13  ;;  %p126_p6 = scmp.eq.s32.totalorder %s823_s22, 3 }
   0xe   : > { %s1496_s25 = smov (%p30_p4, %s1494_s25), 0  ;;  %p131_p8 = scmp.ne.s32.totalorder %s1066_s13, %s1062_s12 }
   0xf   : > { %p1197_p7 = por %p126_p6, %p125_p5  ;;  %s58_s4 = ssub.s32 %s1094_s20, %s1496_s25 }
  0x10   : > { %p132_p9 = scmp.eq.s32.totalorder %s824_s23, 3  ;;  %p59_p10 = scmp.eq.s32.totalorder %s58_s4, 0 }
  0x11   : > { %s112_s5 = sor.u32 %s110_s28, %s58_s4  ;;  %p826_p13 = scmp.ge.s32.totalorder %s1098_s21, 4 }
  0x12   : > { %p113_p11 = scmp.eq.s32.totalorder %s112_s5, 0  ;;  %p1205_p12 = por %p132_p9, %p131_p8 }
  0x13   : > { %s1210_s7 = scalar_select %p59_p10, %s1078_s16, %s61_s26  }
  0x14   : > { %s1213_s8 = scalar_select %p113_p11, %s1070_s14, %s115_s29  }
  0x15   : > { %148 = sbr.rel (%p826_p13) target bundleno = 36 (0x24), region = 16 }
  0x1c   : > { %160 = sbr.rel (!%p1186_p3) target bundleno = 36 (0x24), region = 24  ;;  %s162_s9 = sand.u32 (%p1186_p3), 1, %s1078_s16  }
  0x1d   : > { %s875_s10 = sshll.u32 (%p1186_p3), %s1094_s20, 4  ;;  %s827_s11 = sshll.u32 (%p1186_p3), %s162_s9, 6 }
  0x1e   : > { %s167_s28 = scalar_lea.vmem (%p1186_p3), %s1476_s1, %s875_s10  ;;  %s164_s26 = scalar_lea.vmem (%p1186_p3), [#allocation2], %s827_s11 }
  0x1f   : > { %v180_v0 = vld [vmem:[%s167_s28] sm:$0xff] (%p1186_p3)  ;;  %v182_v1 = vld [vmem:[%s167_s28 + $0x8] sm:$0xff] (%p1186_p3) }
  0x20   : > { %v184_v2 = vld [vmem:[%s167_s28 + $0x20] sm:$0xff] (%p1186_p3)  ;;  %181 = vst [vmem:[%s164_s26] sm:$0xff] (%p1186_p3), %v180_v0  ;;  %183 = vst [vmem:[%s164_s26 + $0x8] sm:$0xff] (%p1186_p3), %v182_v1  ;;  %v186_v3 = vld [vmem:[%s167_s28 + $0x28] sm:$0xff] (%p1186_p3) }
  0x21   : > { %185 = vst [vmem:[%s164_s26 + $0x10] sm:$0xff] (%p1186_p3), %v184_v2  ;;  %v188_v4 = vld [vmem:[%s167_s28 + $0x40] sm:$0xff] (%p1186_p3)  ;;  %v190_v5 = vld [vmem:[%s167_s28 + $0x48] sm:$0xff] (%p1186_p3)  ;;  %187 = vst [vmem:[%s164_s26 + $0x18] sm:$0xff] (%p1186_p3), %v186_v3 }
  0x22   : > { %189 = vst [vmem:[%s164_s26 + $0x20] sm:$0xff] (%p1186_p3), %v188_v4  ;;  %191 = vst [vmem:[%s164_s26 + $0x28] sm:$0xff] (%p1186_p3), %v190_v5  ;;  %v192_v6 = vld [vmem:[%s167_s28 + $0x60] sm:$0xff] (%p1186_p3)  ;;  %v194_v7 = vld [vmem:[%s167_s28 + $0x68] sm:$0xff] (%p1186_p3) }
  0x23   : > { %193 = vst [vmem:[%s164_s26 + $0x30] sm:$0xff] %v192_v6  ;;  %195 = vst [vmem:[%s164_s26 + $0x38] sm:$0xff] %v194_v7 }
  0x24 PF: > { %p830_p0 = scmp.ge.s32.totalorder %s1098_s21, 1  ;;  %p208_p1 = scmp.lt.s32.totalorder %s1098_s21, 5 }
  0x26   : > { %p209_p2 = pnand %p830_p0, %p208_p1 }
  0x27   : > { %s215_s27 = sand.u32 (!%p209_p2), 1, %s1074_s15   ;;  %s833_s29 = sshll.u32 (!%p209_p2), %s1082_s17, 4  ;;  %v1100_v8 = vmov (!%p209_p2), 0   ;;  %vm388_vm0 = vcmask (!%p209_p2), 261120   ;;  %v288_v25 = vlaneseq (!%p209_p2) }
  0x28   : > { %212 = sbr.rel (%p209_p2) target bundleno = 340 (0x154), region = 51  ;;  %s831_s4 = sshll.u32 (!%p209_p2), %s215_s27, 6  ;;  %445 = vmatprep.mubr.bf16.mxu0 (!%p209_p2), %v1100_v8  ;;  %558 = vmatprep.mubr.bf16.mxu1 (!%p209_p2), %v1100_v8 }
  0x29   : > { %p248_p3 = scmp.lt.s32.totalorder (!%p209_p2), %s833_s29, 31  ;;  %s217_s5 = scalar_lea.vmem (!%p209_p2), [#allocation2], %s831_s4  ;;  %v289_v26 = vshrl.u32 (!%p209_p2), %v288_v25, 7 }
  0x2a   : > { %v968_v9 = vld [vmem:[%s217_s5 + $0x4] ss:$16 sps:$4 sm:$0xff] (!%p209_p2)   ;;  %v970_v10 = vld [vmem:[%s217_s5 + $0xc] ss:$16 sps:$4 sm:$0xff] (!%p209_p2)   ;;  %v972_v11 = vld [vmem:[%s217_s5] ss:$16 sps:$4 sm:$0xff] (!%p209_p2)  }
  0x2b   : > { %413 = vmatprep.subr.bf16.mxu0 (!%p209_p2), %v968_v9  ;;  %v973_v12 = vld [vmem:[%s217_s5 + $0x8] ss:$16 sps:$4 sm:$0xff] (!%p209_p2)   ;;  %526 = vmatprep.subr.bf16.mxu1 (!%p209_p2), %v970_v10  ;;  %v974_v13 = vld [vmem:[%s217_s5 + $0x24] ss:$16 sps:$4 sm:$0xff] (!%p209_p2)   ;;  %v976_v14 = vld [vmem:[%s217_s5 + $0x2c] ss:$16 sps:$4 sm:$0xff] (!%p209_p2)  }
  0x2c   : > { %414 = vmatpush1.bf16.msra.mxu0 (!%p209_p2), %v972_v11  ;;  %527 = vmatpush1.bf16.msra.mxu1 (!%p209_p2), %v973_v12  ;;  %v978_v15 = vld [vmem:[%s217_s5 + $0x20] ss:$16 sps:$4 sm:$0xff] (!%p209_p2)   ;;  %v979_v16 = vld [vmem:[%s217_s5 + $0x28] ss:$16 sps:$4 sm:$0xff] (!%p209_p2)   ;;  %s1257_s22 = sshll.u32 (!%p209_p2), %s1086_s18, 2  ;;  %v290_v27 = vsub.s32 (!%p209_p2), 0, %v289_v26 }
  0x2d   : > { %415 = vmatprep.subr.bf16.mxu0 (!%p209_p2), %v974_v13  ;;  %528 = vmatprep.subr.bf16.mxu1 (!%p209_p2), %v976_v14  ;;  %p255_p4 = scmp.lt.s32.totalorder (!%p209_p2), %s1257_s22, 7  ;;  %v298_v28 = vsub.s32 (!%p209_p2), 2, %v289_v26  ;;  %v294_v30 = vsub.s32 (!%p209_p2), 1, %v289_v26  ;;  %v302_v31 = vsub.s32 (!%p209_p2), 3, %v289_v26  ;;  %s876_s5 = sshll.u32 (!%p209_p2), %s1082_s17, 7 }
  0x2e   : > { %s717_s17 = sadd.s32 (!%p209_p2), %s876_s5, %s1257_s22  ;;  %s1101_s26 = smov (!%p209_p2), [#allocation3]  }
  0x2f   : > { %s1498_s29 = smov (!%p248_p3, %s833_s29), 31 }
  0x30   : > { %s834_s9 = sshll.u32 %s1498_s29, 2  ;;  %416 = vmatpush1.bf16.msra.mxu0 %v978_v15  ;;  %529 = vmatpush1.bf16.msra.mxu1 %v979_v16  ;;  %s244_s29 = sand.u32 1, %s1066_s13  }
  0x31   : > { %s1230_s11 = scalar_lea.vmem %s1475_s0, %s834_s9  ;;  %s832_s4 = sshll.u32 %s244_s29, 9 }
  0x32   : > { %v980_v17 = vld [vmem:[%s1230_s11] sm:$0xff]   ;;  %v981_v18 = vld [vmem:[%s1230_s11 + $0x8] sm:$0xff]   ;;  %v982_v19 = vld [vmem:[%s1230_s11 + $0x10] sm:$0xff]   ;;  %s256_s23 = scalar_select %p255_p4, %s1257_s22, 7 }
  0x33   : > { %852 = vmatmul.mubr.msk.bf16.vlgmr.msra.gmra.mrb[0].mxu0 %vm388_vm0, %v980_v17  ;;  %860 = vmatmul.mubr.msk.bf16.vlgmr.msra.gmra.mrb[0].mxu1 %vm388_vm0, %v980_v17  ;;  %v983_v20 = vld [vmem:[%s1230_s11 + $0x18] sm:$0xff]   ;;  %v984_v21 = vld [vmem:[%s1230_s11 + $0x20] sm:$0xff]   ;;  %v985_v22 = vld [vmem:[%s1230_s11 + $0x28] sm:$0xff]   ;;  %s1279_s18 = scalar_lea.vmem [#allocation3], %s832_s4  ;;  %s872_s9 = sshll.u32 %s717_s17, 7 }
  0x34   : > { %455 = vmatprep.mubr.bf16.mxu0 %v1100_v8  ;;  %568 = vmatprep.mubr.bf16.mxu1 %v1100_v8  ;;  %v986_v23 = vld [vmem:[%s1230_s11 + $0x30] sm:$0xff]   ;;  %v987_v24 = vld [vmem:[%s1230_s11 + $0x38] sm:$0xff]   ;;  %s257_s27 = scalar_lea.vmem %s1477_s2, %s256_s23  ;;  %s720_s15 = sshll.u32 %s1279_s18, 4  ;;  %s1405_s15 = int_to_ptr.vmem [resolvable:$true] %s720_s15 }
  0x35   : > { %v286_v29 = vld [vmem:[%s257_s27] sm:$0xf]  ;;  %s1399_s22 = scalar_lea.hbm %s1478_s3, %s872_s9  ;;  %s1417_s23 = scalar_lea.sflag [#allocation4], %s244_s29 }
  0x36   : > { %v1267_v32 = vrot.slane %v286_v29, %v290_v27  ;;  %v1269_v33 = vrot.slane %v286_v29, %v298_v28  ;;  %v1271_v34 = vrot.slane %v286_v29, %v294_v30  ;;  %v1273_v35 = vrot.slane %v286_v29, %v302_v31  ;;  %s988_s28 = scalar_lea.vmem %s1405_s15, 8192  ;;  %s992_s27 = sshll.u32 %s1101_s26, 4  ;;  %s993_s27 = int_to_ptr.vmem [resolvable:$false] %s992_s27 }
  0x37   : > { %p989_p5 = scmp.ne.s32.totalorder %s1405_s15, %s988_s28  ;;  %s994_s4 = scalar_lea.vmem %s993_s27, 16384 }
  0x38   : > { %p995_p9 = scmp.lt.s32.totalorder %s1405_s15, %s993_s27  ;;  %p996_p10 = scmp.lt.s32.totalorder %s994_s4, %s988_s28 }
  0x39   : > { %p990_p6 = pnand %p989_p5, %p1197_p7 }
  0x3a   : > { %p997_p11 = por %p996_p10, %p995_p9 }
  0x3b   : > { %853 = vmatmul.mubr.msk.bf16.gmra.mrb[4].mxu0 %vm388_vm0, %v981_v18  ;;  %861 = vmatmul.mubr.msk.bf16.gmra.mrb[4].mxu1 %vm388_vm0, %v981_v18  ;;  %p991_p8 = pneg %p990_p6 }
  0x3c   : > { %465 = vmatprep.mubr.bf16.mxu0 %v1100_v8  ;;  %578 = vmatprep.mubr.bf16.mxu1 %v1100_v8 }
  0x3d   : > { %p998_p13 = pnand %p997_p11, %p991_p8 }
  0x43   : > { %854 = vmatmul.mubr.msk.bf16.gmra.mrb[8].mxu0 %vm388_vm0, %v982_v19  ;;  %862 = vmatmul.mubr.msk.bf16.gmra.mrb[8].mxu1 %vm388_vm0, %v982_v19 }
  0x44   : > { %475 = vmatprep.mubr.bf16.mxu0 %v1100_v8  ;;  %588 = vmatprep.mubr.bf16.mxu1 %v1100_v8 }
  0x4b   : > { %855 = vmatmul.mubr.msk.bf16.gmra.mrb[12].mxu0 %vm388_vm0, %v983_v20  ;;  %863 = vmatmul.mubr.msk.bf16.gmra.mrb[12].mxu1 %vm388_vm0, %v983_v20 }
  0x4c   : > { %485 = vmatprep.mubr.bf16.mxu0 %v1100_v8  ;;  %598 = vmatprep.mubr.bf16.mxu1 %v1100_v8 }
  0x53   : > { %856 = vmatmul.mubr.msk.bf16.gmra.mrb[16].mxu0 %vm388_vm0, %v984_v21  ;;  %864 = vmatmul.mubr.msk.bf16.gmra.mrb[16].mxu1 %vm388_vm0, %v984_v21 }
  0x54   : > { %495 = vmatprep.mubr.bf16.mxu0 %v1100_v8  ;;  %608 = vmatprep.mubr.bf16.mxu1 %v1100_v8 }
  0x5b   : > { %857 = vmatmul.mubr.msk.bf16.gmra.mrb[20].mxu0 %vm388_vm0, %v985_v22  ;;  %865 = vmatmul.mubr.msk.bf16.gmra.mrb[20].mxu1 %vm388_vm0, %v985_v22 }
  0x5c   : > { %505 = vmatprep.mubr.bf16.mxu0 %v1100_v8  ;;  %618 = vmatprep.mubr.bf16.mxu1 %v1100_v8 }
  0x63   : > { %858 = vmatmul.mubr.msk.bf16.gmra.mrb[24].mxu0 %vm388_vm0, %v986_v23  ;;  %866 = vmatmul.mubr.msk.bf16.gmra.mrb[24].mxu1 %vm388_vm0, %v986_v23 }
  0x64   : > { %515 = vmatprep.mubr.bf16.mxu0 %v1100_v8  ;;  %628 = vmatprep.mubr.bf16.mxu1 %v1100_v8 }
  0x6b   : > { %859 = vmatmul.mubr.msk.bf16.gmra.mrb[28].mxu0 %vm388_vm0, %v987_v24  ;;  %867 = vmatmul.mubr.msk.bf16.gmra.mrb[28].mxu1 %vm388_vm0, %v987_v24 }
 0x106   : > { %v447_v36 = vpop.f32.mrb[0].mxu0  ;;  %v560_v37 = vpop.f32.mrb[0].mxu1 }
 0x107   : > { %v448_v38 = vadd.f32 %v447_v36, %v1267_v32  ;;  %v561_v39 = vadd.f32 %v560_v37, %v1269_v33  ;;  %v449_v40 = vpop.f32.mrb[1].mxu0  ;;  %v562_v41 = vpop.f32.mrb[1].mxu1 }
 0x108   : > { %v450_v42 = vadd.f32 %v449_v40, %v1271_v34  ;;  %v563_v43 = vadd.f32 %v562_v41, %v1273_v35  ;;  %v451_v44 = vpop.f32.mrb[2].mxu0  ;;  %v564_v45 = vpop.f32.mrb[2].mxu1 }
 0x109   : > { %639 = vst [vmem:[%s1279_s18] sm:$0xff] %v448_v38  ;;  %641 = vst [vmem:[%s1279_s18 + $0x10] sm:$0xff] %v561_v39  ;;  %v452_v46 = vadd.f32 %v451_v44, %v1267_v32  ;;  %v565_v47 = vadd.f32 %v564_v45, %v1269_v33  ;;  %v453_v48 = vpop.f32.mrb[3].mxu0  ;;  %v566_v49 = vpop.f32.mrb[3].mxu1 }
 0x10a   : > { %640 = vst [vmem:[%s1279_s18 + $0x8] sm:$0xff] %v450_v42  ;;  %642 = vst [vmem:[%s1279_s18 + $0x18] sm:$0xff] %v563_v43  ;;  %v454_v50 = vadd.f32 %v453_v48, %v1271_v34  ;;  %v567_v51 = vadd.f32 %v566_v49, %v1273_v35 }
 0x10b   : > { %643 = vst [vmem:[%s1279_s18 + $0x20] sm:$0xff] %v452_v46  ;;  %645 = vst [vmem:[%s1279_s18 + $0x30] sm:$0xff] %v565_v47 }
 0x10c   : > { %644 = vst [vmem:[%s1279_s18 + $0x28] sm:$0xff] %v454_v50  ;;  %646 = vst [vmem:[%s1279_s18 + $0x38] sm:$0xff] %v567_v51 }
 0x10e   : > { %v457_v52 = vpop.f32.mrb[4].mxu0  ;;  %v570_v53 = vpop.f32.mrb[4].mxu1 }
 0x10f   : > { %v458_v54 = vadd.f32 %v457_v52, %v1267_v32  ;;  %v571_v55 = vadd.f32 %v570_v53, %v1269_v33  ;;  %v459_v56 = vpop.f32.mrb[5].mxu0  ;;  %v572_v57 = vpop.f32.mrb[5].mxu1 }
 0x110   : > { %v460_v58 = vadd.f32 %v459_v56, %v1271_v34  ;;  %v573_v59 = vadd.f32 %v572_v57, %v1273_v35  ;;  %v461_v60 = vpop.f32.mrb[6].mxu0  ;;  %v574_v61 = vpop.f32.mrb[6].mxu1 }
 0x111   : > { %647 = vst [vmem:[%s1279_s18 + $0x40] sm:$0xff] %v458_v54  ;;  %649 = vst [vmem:[%s1279_s18 + $0x50] sm:$0xff] %v571_v55  ;;  %v462_v62 = vadd.f32 %v461_v60, %v1267_v32  ;;  %v575_v63 = vadd.f32 %v574_v61, %v1269_v33  ;;  %v463_v0 = vpop.f32.mrb[7].mxu0  ;;  %v576_v1 = vpop.f32.mrb[7].mxu1 }
 0x112   : > { %648 = vst [vmem:[%s1279_s18 + $0x48] sm:$0xff] %v460_v58  ;;  %650 = vst [vmem:[%s1279_s18 + $0x58] sm:$0xff] %v573_v59  ;;  %v464_v2 = vadd.f32 %v463_v0, %v1271_v34  ;;  %v577_v3 = vadd.f32 %v576_v1, %v1273_v35 }
 0x113   : > { %651 = vst [vmem:[%s1279_s18 + $0x60] sm:$0xff] %v462_v62  ;;  %653 = vst [vmem:[%s1279_s18 + $0x70] sm:$0xff] %v575_v63 }
 0x114   : > { %652 = vst [vmem:[%s1279_s18 + $0x68] sm:$0xff] %v464_v2  ;;  %654 = vst [vmem:[%s1279_s18 + $0x78] sm:$0xff] %v577_v3 }
 0x116   : > { %v467_v4 = vpop.f32.mrb[8].mxu0  ;;  %v580_v5 = vpop.f32.mrb[8].mxu1 }
 0x117   : > { %v468_v6 = vadd.f32 %v467_v4, %v1267_v32  ;;  %v581_v7 = vadd.f32 %v580_v5, %v1269_v33  ;;  %v469_v8 = vpop.f32.mrb[9].mxu0  ;;  %v582_v9 = vpop.f32.mrb[9].mxu1 }
 0x118   : > { %v470_v10 = vadd.f32 %v469_v8, %v1271_v34  ;;  %v583_v11 = vadd.f32 %v582_v9, %v1273_v35  ;;  %v471_v12 = vpop.f32.mrb[10].mxu0  ;;  %v584_v13 = vpop.f32.mrb[10].mxu1 }
 0x119   : > { %655 = vst [vmem:[%s1279_s18 + $0x80] sm:$0xff] %v468_v6  ;;  %657 = vst [vmem:[%s1279_s18 + $0x90] sm:$0xff] %v581_v7  ;;  %v472_v14 = vadd.f32 %v471_v12, %v1267_v32  ;;  %v585_v15 = vadd.f32 %v584_v13, %v1269_v33  ;;  %v473_v16 = vpop.f32.mrb[11].mxu0  ;;  %v586_v17 = vpop.f32.mrb[11].mxu1 }
 0x11a   : > { %656 = vst [vmem:[%s1279_s18 + $0x88] sm:$0xff] %v470_v10  ;;  %658 = vst [vmem:[%s1279_s18 + $0x98] sm:$0xff] %v583_v11  ;;  %v474_v18 = vadd.f32 %v473_v16, %v1271_v34  ;;  %v587_v19 = vadd.f32 %v586_v17, %v1273_v35 }
 0x11b   : > { %659 = vst [vmem:[%s1279_s18 + $0xa0] sm:$0xff] %v472_v14  ;;  %661 = vst [vmem:[%s1279_s18 + $0xb0] sm:$0xff] %v585_v15 }
 0x11c   : > { %660 = vst [vmem:[%s1279_s18 + $0xa8] sm:$0xff] %v474_v18  ;;  %662 = vst [vmem:[%s1279_s18 + $0xb8] sm:$0xff] %v587_v19 }
 0x11e   : > { %v477_v20 = vpop.f32.mrb[12].mxu0  ;;  %v590_v21 = vpop.f32.mrb[12].mxu1 }
 0x11f   : > { %v478_v22 = vadd.f32 %v477_v20, %v1267_v32  ;;  %v591_v23 = vadd.f32 %v590_v21, %v1269_v33  ;;  %v479_v24 = vpop.f32.mrb[13].mxu0  ;;  %v592_v25 = vpop.f32.mrb[13].mxu1 }
 0x120   : > { %v480_v26 = vadd.f32 %v479_v24, %v1271_v34  ;;  %v593_v27 = vadd.f32 %v592_v25, %v1273_v35  ;;  %v481_v28 = vpop.f32.mrb[14].mxu0  ;;  %v594_v29 = vpop.f32.mrb[14].mxu1 }
 0x121   : > { %663 = vst [vmem:[%s1279_s18 + $0xc0] sm:$0xff] %v478_v22  ;;  %665 = vst [vmem:[%s1279_s18 + $0xd0] sm:$0xff] %v591_v23  ;;  %v482_v30 = vadd.f32 %v481_v28, %v1267_v32  ;;  %v595_v31 = vadd.f32 %v594_v29, %v1269_v33  ;;  %v483_v36 = vpop.f32.mrb[15].mxu0  ;;  %v596_v37 = vpop.f32.mrb[15].mxu1 }
 0x122   : > { %664 = vst [vmem:[%s1279_s18 + $0xc8] sm:$0xff] %v480_v26  ;;  %666 = vst [vmem:[%s1279_s18 + $0xd8] sm:$0xff] %v593_v27  ;;  %v484_v38 = vadd.f32 %v483_v36, %v1271_v34  ;;  %v597_v39 = vadd.f32 %v596_v37, %v1273_v35 }
 0x123   : > { %667 = vst [vmem:[%s1279_s18 + $0xe0] sm:$0xff] %v482_v30  ;;  %669 = vst [vmem:[%s1279_s18 + $0xf0] sm:$0xff] %v595_v31 }
 0x124   : > { %668 = vst [vmem:[%s1279_s18 + $0xe8] sm:$0xff] %v484_v38  ;;  %670 = vst [vmem:[%s1279_s18 + $0xf8] sm:$0xff] %v597_v39 }
 0x126   : > { %v487_v40 = vpop.f32.mrb[16].mxu0  ;;  %v600_v41 = vpop.f32.mrb[16].mxu1 }
 0x127   : > { %v488_v42 = vadd.f32 %v487_v40, %v1267_v32  ;;  %v601_v43 = vadd.f32 %v600_v41, %v1269_v33  ;;  %v489_v44 = vpop.f32.mrb[17].mxu0  ;;  %v602_v45 = vpop.f32.mrb[17].mxu1 }
 0x128   : > { %v490_v46 = vadd.f32 %v489_v44, %v1271_v34  ;;  %v603_v47 = vadd.f32 %v602_v45, %v1273_v35  ;;  %v491_v48 = vpop.f32.mrb[18].mxu0  ;;  %v604_v49 = vpop.f32.mrb[18].mxu1 }
 0x129   : > { %671 = vst [vmem:[%s1279_s18 + $0x100] sm:$0xff] %v488_v42  ;;  %673 = vst [vmem:[%s1279_s18 + $0x110] sm:$0xff] %v601_v43  ;;  %v492_v50 = vadd.f32 %v491_v48, %v1267_v32  ;;  %v605_v51 = vadd.f32 %v604_v49, %v1269_v33  ;;  %v493_v52 = vpop.f32.mrb[19].mxu0  ;;  %v606_v53 = vpop.f32.mrb[19].mxu1 }
 0x12a   : > { %672 = vst [vmem:[%s1279_s18 + $0x108] sm:$0xff] %v490_v46  ;;  %674 = vst [vmem:[%s1279_s18 + $0x118] sm:$0xff] %v603_v47  ;;  %v494_v54 = vadd.f32 %v493_v52, %v1271_v34  ;;  %v607_v55 = vadd.f32 %v606_v53, %v1273_v35 }
 0x12b   : > { %675 = vst [vmem:[%s1279_s18 + $0x120] sm:$0xff] %v492_v50  ;;  %677 = vst [vmem:[%s1279_s18 + $0x130] sm:$0xff] %v605_v51 }
 0x12c   : > { %676 = vst [vmem:[%s1279_s18 + $0x128] sm:$0xff] %v494_v54  ;;  %678 = vst [vmem:[%s1279_s18 + $0x138] sm:$0xff] %v607_v55 }
 0x12e   : > { %v497_v56 = vpop.f32.mrb[20].mxu0  ;;  %v610_v57 = vpop.f32.mrb[20].mxu1 }
 0x12f   : > { %v498_v58 = vadd.f32 %v497_v56, %v1267_v32  ;;  %v611_v59 = vadd.f32 %v610_v57, %v1269_v33  ;;  %v499_v60 = vpop.f32.mrb[21].mxu0  ;;  %v612_v61 = vpop.f32.mrb[21].mxu1 }
 0x130   : > { %v500_v62 = vadd.f32 %v499_v60, %v1271_v34  ;;  %v613_v63 = vadd.f32 %v612_v61, %v1273_v35  ;;  %v501_v0 = vpop.f32.mrb[22].mxu0  ;;  %v614_v1 = vpop.f32.mrb[22].mxu1 }
 0x131   : > { %679 = vst [vmem:[%s1279_s18 + $0x140] sm:$0xff] %v498_v58  ;;  %681 = vst [vmem:[%s1279_s18 + $0x150] sm:$0xff] %v611_v59  ;;  %v502_v2 = vadd.f32 %v501_v0, %v1267_v32  ;;  %v615_v3 = vadd.f32 %v614_v1, %v1269_v33  ;;  %v503_v4 = vpop.f32.mrb[23].mxu0  ;;  %v616_v5 = vpop.f32.mrb[23].mxu1 }
 0x132   : > { %680 = vst [vmem:[%s1279_s18 + $0x148] sm:$0xff] %v500_v62  ;;  %682 = vst [vmem:[%s1279_s18 + $0x158] sm:$0xff] %v613_v63  ;;  %v504_v6 = vadd.f32 %v503_v4, %v1271_v34  ;;  %v617_v7 = vadd.f32 %v616_v5, %v1273_v35 }
 0x133   : > { %683 = vst [vmem:[%s1279_s18 + $0x160] sm:$0xff] %v502_v2  ;;  %685 = vst [vmem:[%s1279_s18 + $0x170] sm:$0xff] %v615_v3 }
 0x134   : > { %684 = vst [vmem:[%s1279_s18 + $0x168] sm:$0xff] %v504_v6  ;;  %686 = vst [vmem:[%s1279_s18 + $0x178] sm:$0xff] %v617_v7 }
 0x136   : > { %v507_v8 = vpop.f32.mrb[24].mxu0  ;;  %v620_v9 = vpop.f32.mrb[24].mxu1 }
 0x137   : > { %v508_v10 = vadd.f32 %v507_v8, %v1267_v32  ;;  %v621_v11 = vadd.f32 %v620_v9, %v1269_v33  ;;  %v509_v12 = vpop.f32.mrb[25].mxu0  ;;  %v622_v13 = vpop.f32.mrb[25].mxu1 }
 0x138   : > { %v510_v14 = vadd.f32 %v509_v12, %v1271_v34  ;;  %v623_v15 = vadd.f32 %v622_v13, %v1273_v35  ;;  %v511_v16 = vpop.f32.mrb[26].mxu0  ;;  %v624_v17 = vpop.f32.mrb[26].mxu1 }
 0x139   : > { %687 = vst [vmem:[%s1279_s18 + $0x180] sm:$0xff] %v508_v10  ;;  %689 = vst [vmem:[%s1279_s18 + $0x190] sm:$0xff] %v621_v11  ;;  %v512_v18 = vadd.f32 %v511_v16, %v1267_v32  ;;  %v625_v19 = vadd.f32 %v624_v17, %v1269_v33  ;;  %v513_v20 = vpop.f32.mrb[27].mxu0  ;;  %v626_v21 = vpop.f32.mrb[27].mxu1 }
 0x13a   : > { %688 = vst [vmem:[%s1279_s18 + $0x188] sm:$0xff] %v510_v14  ;;  %690 = vst [vmem:[%s1279_s18 + $0x198] sm:$0xff] %v623_v15  ;;  %v514_v22 = vadd.f32 %v513_v20, %v1271_v34  ;;  %v627_v23 = vadd.f32 %v626_v21, %v1273_v35 }
 0x13b   : > { %691 = vst [vmem:[%s1279_s18 + $0x1a0] sm:$0xff] %v512_v18  ;;  %693 = vst [vmem:[%s1279_s18 + $0x1b0] sm:$0xff] %v625_v19 }
 0x13c   : > { %692 = vst [vmem:[%s1279_s18 + $0x1a8] sm:$0xff] %v514_v22  ;;  %694 = vst [vmem:[%s1279_s18 + $0x1b8] sm:$0xff] %v627_v23 }
 0x13e   : > { %v517_v24 = vpop.f32.mrb[28].mxu0  ;;  %v630_v25 = vpop.f32.mrb[28].mxu1 }
 0x13f   : > { %v518_v26 = vadd.f32 %v517_v24, %v1267_v32  ;;  %v631_v27 = vadd.f32 %v630_v25, %v1269_v33  ;;  %v519_v28 = vpop.f32.mrb[29].mxu0  ;;  %v632_v29 = vpop.f32.mrb[29].mxu1 }
 0x140   : > { %v520_v30 = vadd.f32 %v519_v28, %v1271_v34  ;;  %v633_v31 = vadd.f32 %v632_v29, %v1273_v35  ;;  %v521_v36 = vpop.f32.mrb[30].mxu0  ;;  %v634_v37 = vpop.f32.mrb[30].mxu1 }
 0x141   : > { %695 = vst [vmem:[%s1279_s18 + $0x1c0] sm:$0xff] %v518_v26  ;;  %697 = vst [vmem:[%s1279_s18 + $0x1d0] sm:$0xff] %v631_v27  ;;  %v522_v38 = vadd.f32 %v521_v36, %v1267_v32  ;;  %v635_v39 = vadd.f32 %v634_v37, %v1269_v33  ;;  %v523_v40 = vpop.f32.mrb[31].mxu0  ;;  %v636_v41 = vpop.f32.mrb[31].mxu1 }
 0x142   : > { %696 = vst [vmem:[%s1279_s18 + $0x1c8] sm:$0xff] %v520_v30  ;;  %698 = vst [vmem:[%s1279_s18 + $0x1d8] sm:$0xff] %v633_v31  ;;  %v524_v42 = vadd.f32 %v523_v40, %v1271_v34  ;;  %v637_v43 = vadd.f32 %v636_v41, %v1273_v35 }
 0x143   : > { %699 = vst [vmem:[%s1279_s18 + $0x1e0] sm:$0xff] %v522_v38  ;;  %701 = vst [vmem:[%s1279_s18 + $0x1f0] sm:$0xff] %v635_v39 }
 0x144   : > { %700 = vst [vmem:[%s1279_s18 + $0x1e8] sm:$0xff] %v524_v42  ;;  %702 = vst [vmem:[%s1279_s18 + $0x1f8] sm:$0xff] %v637_v43 }
 0x145   : > { %1001 = shalt.err (!%p998_p13)
}
 0x146   : > { %s1002_s29 = scalar_lea.hbm %s1399_s22, 8192  ;;  %s1006_s17 = scalar_lea.hbm %s1478_s3, 32768 }
 0x147   : > { %p1003_p0 = scmp.ne.s32.totalorder %s1399_s22, %s1002_s29  ;;  %p1007_p3 = scmp.lt.u32.totalorder %s1399_s22, %s1478_s3 }
 0x148   : > { %p1008_p4 = scmp.lt.u32.totalorder %s1006_s17, %s1002_s29  ;;  %p1010_p6 = scmp.lt.u32.totalorder %s1002_s29, %s1399_s22 }
 0x149   : > { %p1004_p1 = pnand %p1003_p0, %p1197_p7 }
 0x14a   : > { %p1009_p5 = por %p1008_p4, %p1007_p3 }
 0x14b   : > { %p1005_p2 = pneg %p1004_p1 }
 0x14c   : > { %p1011_p8 = por %p1010_p6, %p1009_p5 }
 0x14e   : > { %p1012_p9 = pnand %p1011_p8, %p1005_p2 }
 0x150   : > { %1015 = shalt.err (!%p1012_p9)
}
 0x151   : > { %s1102_s11 = smov 512   ;;  %s1103_s28 = smov 1024  }
 0x152   : > { %s1104_s26 = smov 32  }
 0x153   : > { %877 = dma.vmem_to_hbm [thread:$0]  (%p1197_p7), %s1405_s15, 8192, %s1399_s22, %s1417_s23, %s1102_s11, %s1103_s28, %s1104_s26  }
 0x154 PF: > { %p883_p10 = scmp.ge.s32.totalorder %s1098_s21, 2  ;;  %s735_s27 = sand.u32 1, %s1062_s12  }
 0x155   : > { %s736_s4 = scalar_lea.sflag [#allocation4], %s735_s27 }
 0x156   : > { %p880_p11 = pnand %p883_p10, %p1205_p12 }
 0x158   : > { %1057 = dma.done.wait (!%p880_p11), %s736_s4, 8192  }
 0x159   : > { %1059 = vsyncadd (!%p880_p11), %s736_s4, 4294959104  ;;  %s16_s21 = sadd.s32 1, %s1098_s21   ;;  %s1482_s12 = smov %s1066_s13 }
 0x15a   : > { %p13_p13 = scmp.ge.s32.totalorder %s16_s21, 6   ;;  %s1483_s13 = smov %s1070_s14 }
 0x15b   : > { %s1484_s14 = smov %s1213_s8  ;;  %s1485_s15 = smov %s1078_s16 }
 0x15c   : > { %s1486_s16 = smov %s1210_s7  ;;  %s1487_s17 = smov %s1090_s19 }
 0x15d   : > { %s1488_s18 = smov %s1094_s20  ;;  %s1489_s19 = smov %s1492_s24 }
 0x15e   : > { %s1490_s20 = smov %s1496_s25  ;;  %15 = sbr.rel (!%p13_p13) target bundleno = 6 (0x6), region = 101 }
 0x165   :  { %741 = vsyncpa [#allocation4], 1 }
 0x166   :  { %743 = vsyncpa [#allocation4 + $0x1], 1 }

// kernel: lstm_generator_forward.2
= control target key start
LH: loop header
LB: loop body
LE: loop exit
PB: predicated region body
PF: predicated region fallthrough
CT: control target
= control target key end

     0   :  { %s3094_s0 = inlined_call_operand.vmem [shape: bf16[16,16,32], index: 0, kind: input, shape index: {}]   ;;  %s3095_s1 = inlined_call_operand.vmem [shape: f32[2,16,32], index: 1, kind: input, shape index: {}]   ;;  %s3096_s2 = inlined_call_operand.vmem [shape: f32[2,16,32], index: 2, kind: input, shape index: {}]   ;;  %s3097_s3 = inlined_call_operand.vmem [shape: bf16[2,32,128], index: 3, kind: input, shape index: {}]   ;;  %s3098_s4 = inlined_call_operand.vmem [shape: bf16[2,32,128], index: 4, kind: input, shape index: {}]   ;;  %s3099_s5 = inlined_call_operand.vmem [shape: f32[2,1,128], index: 5, kind: input, shape index: {}]   ;;  %s3100_s6 = inlined_call_operand.vmem [shape: bf16[16,16,32], index: 6, kind: output, shape index: {0}]   ;;  %s3101_s7 = inlined_call_operand.hbm [shape: f32[2,16,32], index: 7, kind: output, shape index: {1}]   ;;  %s3102_s8 = inlined_call_operand.hbm [shape: f32[2,16,32], index: 8, kind: output, shape index: {2}]  }
   0x1   :  { %3112 = sst [smem:[#allocation21_spill]] %s3094_s0 }
   0x2   :  { %3113 = sst [smem:[#allocation22_spill]] %s3102_s8 }
   0x3   :  { %14 = vsyncpa [#allocation6], 0 }
   0x4   :  { %16 = vsyncpa [#allocation6 + $0x1], 0 }
   0x5   :  { %17 = vsyncpa [#allocation8], 0 }
   0x6   :  { %19 = vsyncpa [#allocation8 + $0x1], 0  ;;  %s2606_s27 = smov 0   ;;  %s2608_s28 = smov 0  }
   0x7   :  { %s2610_s29 = smov 0   ;;  %s2612_s30 = smov 0  }
   0x8   :  { %s2614_s9 = smov 0   ;;  %s2616_s10 = smov 0  }
   0x9   :  { %s2618_s11 = smov 0   ;;  %s2620_s12 = smov 0  }
   0xa   :  { %s2622_s13 = smov 0   ;;  %s2624_s14 = smov 0  }
   0xb LB: > { %3114 = sst [smem:[#allocation11_spill]] %s2508_s28  ;;  %s1939_s15 = sadd.s32 4294967295, %s2540_s14   ;;  %s2540_s14 = sphi %s2624_s14, %s25_s14   ;;  %s2536_s13 = sphi %s2622_s13, %s3142_s13   ;;  %s2532_s12 = sphi %s2620_s12, %s3141_s12   ;;  %s2528_s11 = sphi %s2618_s11, %s3140_s11   ;;  %s2524_s10 = sphi %s2616_s10, %s3139_s10   ;;  %s2520_s9 = sphi %s2614_s9, %s3138_s9   ;;  %s2516_s30 = sphi %s2612_s30, %s3137_s30   ;;  %s2512_s29 = sphi %s2610_s29, %s3136_s29   ;;  %s2508_s28 = sphi %s2608_s28, %s3135_s28   ;;  %s2504_s27 = sphi %s2606_s27, %s3134_s27  }
   0xc   : > { %3115 = sst [smem:[#allocation12_spill]] %s2512_s29  ;;  %s1940_s16 = sadd.s32 4294967294, %s2540_s14  }
   0xd   : > { %3116 = sst [smem:[#allocation13_spill]] %s2520_s9  ;;  %s34_s17 = sadd.s32 1, %s2532_s12 }
   0xe   : > { %3117 = sst [smem:[#allocation14_spill]] %s2532_s12  ;;  %s37_s18 = sadd.s32 1, %s2536_s13 }
   0xf   : > { %3118 = sst [smem:[#allocation15_spill]] %s2536_s13  ;;  %p35_p0 = scmp.ge.s32.totalorder %s34_s17, 2 }
  0x10   : > { %s44_s19 = sadd.s32 1, %s2520_s9  ;;  %p51_p1 = scmp.ne.s32.totalorder %s2520_s9, %s2516_s30 }
  0x11   : > { %p52_p2 = scmp.eq.s32.totalorder %s2540_s14, 0  ;;  %s3144_s17 = smov (%p35_p0, %s34_s17), 0 }
  0x12   : > { %3119 = sst [smem:[#allocation16_spill]] %s3144_s17  ;;  %s3146_s18 = smov (!%p35_p0, %s37_s18), %s2536_s13 }
  0x13   : > { %p2667_p3 = por %p52_p2, %p51_p1  ;;  %p2671_p4 = scmp.eq.s32.totalorder %s1939_s15, 3 }
  0x14   : > { %p39_p5 = scmp.ge.s32.totalorder %s3146_s18, 2  ;;  %s227_s22 = ssub.s32 %s2532_s12, %s3144_s17 }
  0x15   : > { %p2679_p6 = por %p2671_p4, %p51_p1  ;;  %s232_s24 = sadd.s32 1, %s2512_s29 }
  0x16   : > { %s3148_s18 = smov (%p39_p5, %s3146_s18), 0  ;;  %p242_p7 = scmp.ne.s32.totalorder %s2512_s29, %s2508_s28 }
  0x17   : > { %3123 = sst [smem:[#allocation17_spill]] %s3148_s18  ;;  %p248_p8 = scmp.ne.s32.totalorder %s2508_s28, %s2504_s27 }
  0x18   : > { %s41_s25 = ssub.s32 %s2536_s13, %s3148_s18  ;;  %p249_p9 = scmp.eq.s32.totalorder %s1940_s16, 3 }
  0x19   : > { %p42_p10 = scmp.eq.s32.totalorder %s41_s25, 0  ;;  %s229_s26 = sor.u32 %s227_s22, %s41_s25 }
  0x1a   : > { %p230_p11 = scmp.eq.s32.totalorder %s229_s26, 0  ;;  %p2694_p12 = por %p242_p7, %p2671_p4 }
  0x1b   : > { %s2699_s17 = scalar_select %p42_p10, %s2520_s9, %s44_s19  }
  0x1c   : > { %s2702_s12 = scalar_select %p230_p11, %s2512_s29, %s232_s24  }
  0x1d   : > { %3125 = sst [smem:[#allocation18_spill]] %s2699_s17  ;;  %p2704_p13 = por %p249_p9, %p248_p8 }
  0x1e   : > { %3126 = sst [smem:[#allocation19_spill]] %s2702_s12  ;;  %p1942_p0 = scmp.ge.s32.totalorder %s2540_s14, 4 }
  0x1f   : > { %s3127_s8 = scalar_select %p2704_p13, 1, 0 }
  0x20   : > { %293 = sbr.rel (%p1942_p0) target bundleno = 59 (0x3b), region = 16 }
  0x21   : > { %3128 = sst [smem:[#allocation20_spill]] %s3127_s8 }
  0x27   : > { %296 = sbr.rel (!%p2667_p3) target bundleno = 59 (0x3b), region = 20  ;;  %s298_s16 = sand.u32 (%p2667_p3), 1, %s2520_s9  }
  0x28   : > { %s1944_s21 = sshll.u32 (%p2667_p3), %s2536_s13, 2  ;;  %s1943_s22 = sshll.u32 (%p2667_p3), %s298_s16, 6 }
  0x29   : > { %s3129_s0 = sld [smem:[#allocation21_spill]] (%p2667_p3)  ;;  %s300_s20 = scalar_lea.vmem (%p2667_p3), [#allocation3], %s1943_s22 }
  0x2f   : > { %s2716_s24 = scalar_lea.vmem %s3129_s0, %s1944_s21 }
  0x30   : > { %v318_v0 = vld [vmem:[%s2716_s24] sm:$0xf]  ;;  %v320_v1 = vld [vmem:[%s2716_s24 + $0x8] sm:$0xf]  ;;  %v322_v2 = vld [vmem:[%s2716_s24 + $0x10] sm:$0xf] }
  0x31   : > { %319 = vst [vmem:[%s300_s20] sm:$0xf] %v318_v0  ;;  %321 = vst [vmem:[%s300_s20 + $0x4] sm:$0xf] %v320_v1  ;;  %v324_v3 = vld [vmem:[%s2716_s24 + $0x18] sm:$0xf] }
  0x32   : > { %v326_v4 = vld [vmem:[%s2716_s24 + $0x20] sm:$0xf]  ;;  %323 = vst [vmem:[%s300_s20 + $0x8] sm:$0xf] %v322_v2  ;;  %325 = vst [vmem:[%s300_s20 + $0xc] sm:$0xf] %v324_v3 }
  0x33   : > { %327 = vst [vmem:[%s300_s20 + $0x10] sm:$0xf] %v326_v4  ;;  %v328_v5 = vld [vmem:[%s2716_s24 + $0x28] sm:$0xf]  ;;  %v330_v6 = vld [vmem:[%s2716_s24 + $0x30] sm:$0xf] }
  0x34   : > { %v332_v7 = vld [vmem:[%s2716_s24 + $0x38] sm:$0xf]  ;;  %329 = vst [vmem:[%s300_s20 + $0x14] sm:$0xf] %v328_v5  ;;  %331 = vst [vmem:[%s300_s20 + $0x18] sm:$0xf] %v330_v6 }
  0x35   : > { %333 = vst [vmem:[%s300_s20 + $0x1c] sm:$0xf] %v332_v7  ;;  %v334_v8 = vld [vmem:[%s2716_s24 + $0x40] sm:$0xf]  ;;  %v336_v9 = vld [vmem:[%s2716_s24 + $0x48] sm:$0xf] }
  0x36   : > { %v338_v10 = vld [vmem:[%s2716_s24 + $0x50] sm:$0xf]  ;;  %335 = vst [vmem:[%s300_s20 + $0x20] sm:$0xf] %v334_v8  ;;  %337 = vst [vmem:[%s300_s20 + $0x24] sm:$0xf] %v336_v9 }
  0x37   : > { %339 = vst [vmem:[%s300_s20 + $0x28] sm:$0xf] %v338_v10  ;;  %v340_v11 = vld [vmem:[%s2716_s24 + $0x58] sm:$0xf]  ;;  %v342_v12 = vld [vmem:[%s2716_s24 + $0x60] sm:$0xf] }
  0x38   : > { %v344_v13 = vld [vmem:[%s2716_s24 + $0x68] sm:$0xf]  ;;  %341 = vst [vmem:[%s300_s20 + $0x2c] sm:$0xf] %v340_v11  ;;  %343 = vst [vmem:[%s300_s20 + $0x30] sm:$0xf] %v342_v12 }
  0x39   : > { %345 = vst [vmem:[%s300_s20 + $0x34] sm:$0xf] %v344_v13  ;;  %v346_v14 = vld [vmem:[%s2716_s24 + $0x70] sm:$0xf]  ;;  %v348_v15 = vld [vmem:[%s2716_s24 + $0x78] sm:$0xf] }
  0x3a   : > { %347 = vst [vmem:[%s300_s20 + $0x38] sm:$0xf] %v346_v14  ;;  %349 = vst [vmem:[%s300_s20 + $0x3c] sm:$0xf] %v348_v15 }
  0x3b PF: > { %p1945_p1 = scmp.ge.s32.totalorder %s2540_s14, 1  ;;  %p447_p2 = scmp.lt.s32.totalorder %s2540_s14, 5 }
  0x3d   : > { %p448_p3 = pnand %p1945_p1, %p447_p2 }
  0x3e   : > { %s454_s26 = sand.u32 (!%p448_p3), 1, %s2516_s30   ;;  %s2738_s16 = sand.u32 (!%p448_p3), 1, %s2508_s28  }
  0x3f   : > { %451 = sbr.rel (%p448_p3) target bundleno = 6245 (0x1865), region = 81  ;;  %s2740_s21 = sshll.u32 (!%p448_p3), %s454_s26, 6 }
  0x40   : > { %s1948_s22 = sshll.u32 (!%p448_p3), %s2738_s16, 3  ;;  %p525_p4 = scmp.lt.s32.totalorder (!%p448_p3), %s2524_s10, 1 }
  0x41   : > { %p527_p5 = scmp.lt.s32.totalorder (!%p448_p3), %s2528_s11, 1  ;;  %s456_s28 = scalar_lea.vmem (!%p448_p3), [#allocation3], %s2740_s21 }
  0x46   : > { %s526_s25 = scalar_select %p525_p4, %s2524_s10, 1 }
  0x47   : > { %s528_s19 = scalar_select %p527_p5, %s2528_s11, 1 }
  0x48   : > { %s1950_s24 = sshll.u32 %s526_s25, 1  ;;  %s2041_s20 = sshll.u32 %s526_s25, 4 }
  0x49   : > { %s530_s0 = sadd.s32 %s1950_s24, %s528_s19  ;;  %s545_s17 = scalar_lea.vmem %s3097_s3, %s2041_s20 }
  0x4a   : > { %s1951_s9 = sshll.u32 %s530_s0, 3  ;;  %s550_s29 = scalar_lea.vmem %s3098_s4, %s2041_s20  ;;  %v2753_v16 = vld [vmem:[%s545_s17] sm:$0xf]  ;;  %v2755_v17 = vld [vmem:[%s545_s17 + $0x4] sm:$0xf] }
  0x4b   : > { %s532_s8 = scalar_lea.vmem %s3095_s1, %s1951_s9  ;;  %s540_s13 = scalar_lea.vmem %s3096_s2, %s1951_s9  ;;  %v2763_v18 = vld [vmem:[%s545_s17 + $0x8] sm:$0xf]  ;;  %v2765_v19 = vld [vmem:[%s545_s17 + $0xc] sm:$0xf]  ;;  %v2767_v20 = vld [vmem:[%s550_s29] sm:$0xf] }
  0x4c   : > { %s553_s18 = scalar_lea.vmem %s3099_s5, %s526_s25  ;;  %v2772_v21 = vld [vmem:[%s550_s29 + $0x4] sm:$0xf]  ;;  %v2774_v22 = vld [vmem:[%s550_s29 + $0x8] sm:$0xf]  ;;  %v2776_v23 = vld [vmem:[%s550_s29 + $0xc] sm:$0xf] }
  0x4d   : > { %v2778_v24 = vld [vmem:[%s553_s18] sm:$0x1]  ;;  %s2782_s9 = scalar_lea.vmem [#allocation4], %s2740_s21  ;;  %s2784_s17 = scalar_lea.vmem [#allocation5], %s1948_s22 }
  0x4e   : > { %v564_v25 = vld [vmem:[%s532_s8] sm:$0xff]   ;;  %s2786_s20 = scalar_lea.vmem [#allocation7], %s1948_s22  ;;  %s2792_s25 = smov 0  }
  0x4f   : > { %v565_v26 = vld [vmem:[%s540_s13] sm:$0xff]  }
  0x50 LB: >> { %p1959_p7 = scmp.ne.s32.totalorder %s2524_s10, 0  ;;  %s2552_s25 = sphi %s2792_s25, %s571_s25   ;;  %v2548_v25 = vphi %v564_v25, %v3131_v25   ;;  %v2544_v26 = vphi %v565_v26, %v3130_v26  }
  0x51   : >> { %v1965_v27 = vcombine.low (!%p1959_p7), %v2753_v16, %v2755_v17  ;;  %v1966_v28 = vcombine.low (!%p1959_p7), %v2763_v18, %v2765_v19  ;;  %s2043_s8 = sshll.u32 (!%p1959_p7), %s2552_s25, 5  ;;  %vm627_vm0 = vcmask (!%p1959_p7), 261120   ;;  %v590_v33 = vlaneseq (!%p1959_p7) }
  0x52   : >> { %578 = sbr.rel (%p1959_p7) target bundleno = 309 (0x135), region = 96  ;;  %s580_s29 = scalar_lea.vmem (!%p1959_p7), %s456_s28, %s2043_s8 [#allocation3] }
  0x53   : >> { %2097 = vmatprep.subr.bf16.mxu0 (!%p1959_p7), %v1965_v27  ;;  %2185 = vmatprep.subr.bf16.mxu1 (!%p1959_p7), %v1965_v27  ;;  %v2314_v29 = vld [vmem:[%s580_s29] sm:$0xff] (!%p1959_p7)   ;;  %v2315_v30 = vld [vmem:[%s580_s29 + $0x10] sm:$0xff] (!%p1959_p7)   ;;  %v2316_v31 = vld [vmem:[%s580_s29 + $0x8] sm:$0xff] (!%p1959_p7)   ;;  %v591_v34 = vshrl.u32 (!%p1959_p7), %v590_v33, 7 }
  0x54   : >> { %2098 = vmatpush3.bf16.msra.mxu0 (!%p1959_p7), %v1965_v27  ;;  %2187 = vmatpush3.bf16.msra.mxu1 (!%p1959_p7), %v1965_v27  ;;  %v2317_v32 = vld [vmem:[%s580_s29 + $0x18] sm:$0xff] (!%p1959_p7)  }
  0x55   : >> { %2099 = vmatprep.subr.bf16.mxu0 (!%p1959_p7), %v1966_v28  ;;  %2186 = vmatprep.subr.bf16.mxu1 (!%p1959_p7), %v1966_v28  ;;  %v592_v35 = vsub.s32 (!%p1959_p7), 0, %v591_v34 }
  0x56   : >> { %2101 = vmatprep.mubr.msk.bf16.mxu0 (!%p1959_p7), %vm627_vm0, %v2314_v29  ;;  %2105 = vmatprep.mubr.msk.bf16.mxu1 (!%p1959_p7), %vm627_vm0, %v2315_v30 }
  0x57   : >> { %v593_v36 = vrot.slane (!%p1959_p7), %v2778_v24, %v592_v35 }
  0x58   : >> { %2100 = vmatpush3.bf16.msra.mxu0 (!%p1959_p7), %v1966_v28  ;;  %2188 = vmatpush3.bf16.msra.mxu1 (!%p1959_p7), %v1966_v28 }
  0x5b   : >> { %2102 = vmatmul.mubr.msk.bf16.vlgmr.msra.gmra.mrb[0].mxu0 %vm627_vm0, %v2316_v31  ;;  %2106 = vmatmul.mubr.msk.bf16.vlgmr.msra.gmra.mrb[0].mxu1 %vm627_vm0, %v2317_v32 }
 0x12e   : >> { %v2103_v37 = vpop.f32.mrb[0].mxu0  ;;  %v2107_v38 = vpop.f32.mrb[0].mxu1 }
 0x12f   : >> { %v683_v39 = vadd.f32 %v2103_v37, %v593_v36  ;;  %v699_v40 = vadd.f32 %v2107_v38, %v593_v36  ;;  %v674_v41 = vpop.f32.mrb[1].mxu0  ;;  %v690_v42 = vpop.f32.mrb[1].mxu1 }
 0x130   : >> { %v675_v43 = vadd.f32 %v674_v41, %v593_v36  ;;  %v691_v44 = vadd.f32 %v690_v42, %v593_v36  ;;  %v2104_v45 = vpop.f32.mrb[2].mxu0  ;;  %v2108_v46 = vpop.f32.mrb[2].mxu1 }
 0x131   : >> { %707 = vst [vmem:[#allocation2 + $0x10] sm:$0xff] %v683_v39  ;;  %711 = vst [vmem:[#allocation2 + $0x30] sm:$0xff] %v699_v40  ;;  %v686_v47 = vadd.f32 %v2104_v45, %v593_v36  ;;  %v702_v48 = vadd.f32 %v2108_v46, %v593_v36  ;;  %v677_v49 = vpop.f32.mrb[3].mxu0  ;;  %v693_v50 = vpop.f32.mrb[3].mxu1 }
 0x132   : >> { %705 = vst [vmem:[#allocation2] sm:$0xff] %v675_v43  ;;  %709 = vst [vmem:[#allocation2 + $0x20] sm:$0xff] %v691_v44  ;;  %v678_v51 = vadd.f32 %v677_v49, %v593_v36  ;;  %v694_v52 = vadd.f32 %v693_v50, %v593_v36 }
 0x133   : >> { %708 = vst [vmem:[#allocation2 + $0x18] sm:$0xff] %v686_v47  ;;  %712 = vst [vmem:[#allocation2 + $0x38] sm:$0xff] %v702_v48 }
 0x134   : >> { %706 = vst [vmem:[#allocation2 + $0x8] sm:$0xff] %v678_v51  ;;  %710 = vst [vmem:[#allocation2 + $0x28] sm:$0xff] %v694_v52 }
 0x135 PF: >> { %p1971_p8 = scmp.le.s32.totalorder %s2524_s10, 0 }
 0x136   : >> { %v1977_v53 = vcombine.low (!%p1971_p8), %v2753_v16, %v2755_v17  ;;  %v1978_v54 = vcombine.low (!%p1971_p8), %v2763_v18, %v2765_v19  ;;  %s2044_s22 = sshll.u32 (!%p1971_p8), %s2552_s25, 5  ;;  %vm765_vm1 = vcmask (!%p1971_p8), 261120   ;;  %v728_v59 = vlaneseq (!%p1971_p8) }
 0x137   : >> { %716 = sbr.rel (%p1971_p8) target bundleno = 538 (0x21a), region = 100  ;;  %s718_s30 = scalar_lea.vmem (!%p1971_p8), %s2782_s9, %s2044_s22 [#allocation4] }
 0x138   : >> { %2109 = vmatprep.subr.bf16.mxu0 (!%p1971_p8), %v1977_v53  ;;  %2189 = vmatprep.subr.bf16.mxu1 (!%p1971_p8), %v1977_v53  ;;  %v2318_v55 = vld [vmem:[%s718_s30] sm:$0xff] (!%p1971_p8)   ;;  %v2319_v56 = vld [vmem:[%s718_s30 + $0x10] sm:$0xff] (!%p1971_p8)   ;;  %v2320_v57 = vld [vmem:[%s718_s30 + $0x8] sm:$0xff] (!%p1971_p8)   ;;  %v729_v60 = vshrl.u32 (!%p1971_p8), %v728_v59, 7 }
 0x139   : >> { %2110 = vmatpush3.bf16.msra.mxu0 (!%p1971_p8), %v1977_v53  ;;  %2191 = vmatpush3.bf16.msra.mxu1 (!%p1971_p8), %v1977_v53  ;;  %v2321_v58 = vld [vmem:[%s718_s30 + $0x18] sm:$0xff] (!%p1971_p8)  }
 0x13a   : >> { %2111 = vmatprep.subr.bf16.mxu0 (!%p1971_p8), %v1978_v54  ;;  %2190 = vmatprep.subr.bf16.mxu1 (!%p1971_p8), %v1978_v54  ;;  %v730_v61 = vsub.s32 (!%p1971_p8), 0, %v729_v60 }
 0x13b   : >> { %2113 = vmatprep.mubr.msk.bf16.mxu0 (!%p1971_p8), %vm765_vm1, %v2318_v55  ;;  %2117 = vmatprep.mubr.msk.bf16.mxu1 (!%p1971_p8), %vm765_vm1, %v2319_v56 }
 0x13c   : >> { %v731_v62 = vrot.slane (!%p1971_p8), %v2778_v24, %v730_v61 }
 0x13d   : >> { %2112 = vmatpush3.bf16.msra.mxu0 (!%p1971_p8), %v1978_v54  ;;  %2192 = vmatpush3.bf16.msra.mxu1 (!%p1971_p8), %v1978_v54 }
 0x140   : >> { %2114 = vmatmul.mubr.msk.bf16.vlgmr.msra.gmra.mrb[0].mxu0 %vm765_vm1, %v2320_v57  ;;  %2118 = vmatmul.mubr.msk.bf16.vlgmr.msra.gmra.mrb[0].mxu1 %vm765_vm1, %v2321_v58 }
 0x213   : >> { %v2115_v63 = vpop.f32.mrb[0].mxu0  ;;  %v2119_v0 = vpop.f32.mrb[0].mxu1 }
 0x214   : >> { %v821_v1 = vadd.f32 %v2115_v63, %v731_v62  ;;  %v837_v2 = vadd.f32 %v2119_v0, %v731_v62  ;;  %v812_v3 = vpop.f32.mrb[1].mxu0  ;;  %v828_v4 = vpop.f32.mrb[1].mxu1 }
 0x215   : >> { %v813_v5 = vadd.f32 %v812_v3, %v731_v62  ;;  %v829_v6 = vadd.f32 %v828_v4, %v731_v62  ;;  %v2116_v7 = vpop.f32.mrb[2].mxu0  ;;  %v2120_v8 = vpop.f32.mrb[2].mxu1 }
 0x216   : >> { %845 = vst [vmem:[#allocation2 + $0x10] sm:$0xff] %v821_v1  ;;  %849 = vst [vmem:[#allocation2 + $0x30] sm:$0xff] %v837_v2  ;;  %v824_v9 = vadd.f32 %v2116_v7, %v731_v62  ;;  %v840_v10 = vadd.f32 %v2120_v8, %v731_v62  ;;  %v815_v11 = vpop.f32.mrb[3].mxu0  ;;  %v831_v12 = vpop.f32.mrb[3].mxu1 }
 0x217   : >> { %843 = vst [vmem:[#allocation2] sm:$0xff] %v813_v5  ;;  %847 = vst [vmem:[#allocation2 + $0x20] sm:$0xff] %v829_v6  ;;  %v816_v13 = vadd.f32 %v815_v11, %v731_v62  ;;  %v832_v14 = vadd.f32 %v831_v12, %v731_v62 }
 0x218   : >> { %846 = vst [vmem:[#allocation2 + $0x18] sm:$0xff] %v824_v9  ;;  %850 = vst [vmem:[#allocation2 + $0x38] sm:$0xff] %v840_v10 }
 0x219   : >> { %844 = vst [vmem:[#allocation2 + $0x8] sm:$0xff] %v816_v13  ;;  %848 = vst [vmem:[#allocation2 + $0x28] sm:$0xff] %v832_v14 }
 0x21a PF: >> { %v2822_v15 = vcombine.low %v2767_v20, %v2772_v21  ;;  %v2554_v27 = vmov 0.0   ;;  %vm2555_vm2 = vmmov 0   ;;  %v2830_v28 = vcombine.low %v2774_v22, %v2776_v23  ;;  %s2556_s26 = smov 64   ;;  %s2557_s19 = smov 32  }
 0x21b   : >> { %2121 = vmatprep.subr.bf16.mxu0 %v2554_v27  ;;  %2125 = vmatprep.mubr.msk.bf16.mxu0 %vm2555_vm2, %v2554_v27  ;;  %v852_v29 = vpack.c.bf16 %v2548_v25, %v2548_v25  ;;  %vm865_vm3 = vcmask 261120   ;;  %s2046_s24 = sshll.u32 %s2552_s25, 5  ;;  %vm947_vm4 = vcmask 257024   ;;  %s2558_s0 = smov 96  }
 0x21c   : >> { %2122 = vmatpush3.bf16.msra.mxu0 %v2822_v15  ;;  %2129 = vmatprep.subr.bf16.mxu1 %v2554_v27  ;;  %s2945_s13 = scalar_lea.vmem %s2782_s9, %s2046_s24 [#allocation4]  ;;  %s571_s25 = sadd.s32 1, %s2552_s25  }
 0x21d   : >> { %2123 = vmatprep.subr.bf16.mxu0 %v2554_v27  ;;  %2130 = vmatpush3.bf16.msra.mxu1 %v2822_v15  ;;  %v1033_v7 = vld [vmem:[#allocation2 + $0x10] sm:$0xff]  ;;  %p568_p9 = scmp.ge.s32.totalorder %s571_s25, 2  }
 0x21e   : >> { %2131 = vmatprep.subr.bf16.mxu1 %v2554_v27  ;;  %2133 = vmatprep.mubr.msk.bf16.mxu1 %vm2555_vm2, %v2554_v27  ;;  %v851_v25 = vld [vmem:[#allocation2] sm:$0xff]  ;;  %s1546_s12 = scalar_lea.sflag (%p568_p9), [#allocation6], %s2738_s16  ;;  %s1551_s18 = scalar_lea.sflag (%p568_p9), [#allocation8], %s2738_s16 }
 0x220   : >> { %2124 = vmatpush3.bf16.msra.mxu0 %v2830_v28  ;;  %v950_v50 = vld [vmem:[#allocation2 + $0x8] sm:$0xff] }
 0x221   : >> { %2132 = vmatpush3.bf16.msra.mxu1 %v2830_v28  ;;  %2137 = vmatprep.subr.bf16.mxu0 %v2554_v27 }
 0x222   : >> { %2145 = vmatprep.subr.bf16.mxu1 %v2554_v27 }
 0x223   : >> { %2126 = vmatmul.mubr.msk.bf16.vlgmr.msra.gmra.mrb[0].mxu0 %vm865_vm3, %v852_v29 }
 0x224   : >> { %2138 = vmatpush3.bf16.msra.mxu0 %v2822_v15  ;;  %2141 = vmatprep.mubr.msk.bf16.mxu0 %vm2555_vm2, %v2554_v27 }
 0x225   : >> { %2139 = vmatprep.subr.bf16.mxu0 %v2554_v27 }
 0x228   : >> { %2140 = vmatpush3.bf16.msra.mxu0 %v2830_v28 }
 0x229   : >> { %2153 = vmatprep.subr.bf16.mxu0 %v2554_v27 }
 0x2f6   : >> { %v903_v30 = vpop.f32.mrb[0].mxu0 }
 0x2f7   : >> { %v909_v31 = vadd.f32 %v903_v30, %v851_v25  ;;  %v2127_v32 = vpop.f32.mrb[1].mxu0 }
 0x2f8   : >> { %v906_v33 = vpop.f32.mrb[2].mxu0 }
 0x2f9   : >> { %2322 = vtanh.f32 %v909_v31  ;;  %v2128_v34 = vpop.f32.mrb[3].mxu0  ;;  %v1986_v36 = vmul.f32 -1.442695, %v909_v31 }
 0x2fb   : >> { %2324 = vpow2.f32 %v1986_v36 }
 0x303   : >> { %v2323_v35 = vpop.eup %2322 }
 0x304   : >> { %923 = vrot.lane.b32.xlu0 %v2323_v35, %s2556_s26 }
 0x305   : >> { %v2325_v37 = vpop.eup %2324 }
 0x306   : >> { %v913_v38 = vadd.f32 1.0, %v2325_v37 }
 0x308   : >> { %918 = vrot.lane.b32.xlu0 %v2544_v26, %s2557_s19  ;;  %2326 = vrcp.f32 %v913_v38 }
 0x312   : >> { %v2327_v39 = vpop.eup %2326 }
 0x376   : >> { %v924_v40 = vpop.permute.xlu0 %923 }
 0x377   : >> { %v926_v41 = vmul.f32 %v2327_v39, %v924_v40 }
 0x379   : >> { %928 = vrot.lane.b32.xlu1 %v926_v41, %s2557_s19  ;;  %v1116_v41 = vld [vmem:[#allocation2 + $0x18] sm:$0xff] }
 0x37a   : >> { %v919_v42 = vpop.permute.xlu0 %918 }
 0x37b   : >> { %v921_v43 = vmul.f32 %v2327_v39, %v919_v42 }
 0x3eb   : >> { %v929_v44 = vpop.permute.xlu1 %928 }
 0x3ec   : >> { %v931_v45 = vadd.f32 %v929_v44, %v921_v43 }
 0x3ee   : >> { %2328 = vtanh.f32 %v931_v45 }
 0x3f8   : >> { %v2329_v46 = vpop.eup %2328 }
 0x3f9   : >> { %934 = vrot.lane.b32.xlu1 %v2329_v46, %s2556_s26 }
 0x46b   : >> { %v935_v47 = vpop.permute.xlu1 %934 }
 0x46c   : >> { %v937_v26 = vmul.f32 %v2327_v39, %v935_v47 }
 0x46e   : >> { %v2856_v48 = vpack.c.bf16 %v937_v26, %v937_v26 }
 0x470   : >> { %951 = vrot.lane.b32.xlu0 %v2856_v48, %s2557_s19 }
 0x4e2   : >> { %v952_v49 = vpop.permute.xlu0 %951 }
 0x4e3   : >> { %2134 = vmatmul.mubr.msk.bf16.vlgmr.msra.gmra.mrb[0].mxu1 %vm865_vm3, %v952_v49 }
 0x4e4   : >> { %2146 = vmatpush3.bf16.msra.mxu1 %v2822_v15  ;;  %2149 = vmatprep.mubr.msk.bf16.mxu1 %vm2555_vm2, %v2554_v27 }
 0x4e5   : >> { %2147 = vmatprep.subr.bf16.mxu1 %v2554_v27 }
 0x4e8   : >> { %2148 = vmatpush3.bf16.msra.mxu1 %v2830_v28 }
 0x4e9   : >> { %2161 = vmatprep.subr.bf16.mxu1 %v2554_v27 }
 0x5b6   : >> { %v990_v51 = vpop.f32.mrb[0].mxu1 }
 0x5b7   : >> { %v996_v52 = vadd.f32 %v990_v51, %v950_v50  ;;  %v2135_v53 = vpop.f32.mrb[1].mxu1 }
 0x5b8   : >> { %v993_v54 = vpop.f32.mrb[2].mxu1 }
 0x5b9   : >> { %2330 = vtanh.f32 %v996_v52  ;;  %v2136_v55 = vpop.f32.mrb[3].mxu1  ;;  %v1990_v57 = vmul.f32 -1.442695, %v996_v52 }
 0x5bb   : >> { %2332 = vpow2.f32 %v1990_v57 }
 0x5c3   : >> { %v2331_v56 = vpop.eup %2330 }
 0x5c4   : >> { %1006 = vrot.lane.b32.xlu1 %v2331_v56, %s2556_s26 }
 0x5c5   : >> { %v2333_v58 = vpop.eup %2332 }
 0x5c6   : >> { %v1000_v59 = vadd.f32 1.0, %v2333_v58 }
 0x5c8   : >> { %2334 = vrcp.f32 %v1000_v59 }
 0x5d2   : >> { %v2335_v60 = vpop.eup %2334 }
 0x5d3   : >> { %v1004_v63 = vmul.f32 %v2335_v60, %v931_v45 }
 0x636   : >> { %v1007_v61 = vpop.permute.xlu1 %1006 }
 0x637   : >> { %v1009_v62 = vmul.f32 %v2335_v60, %v1007_v61 }
 0x639   : >> { %1011 = vrot.lane.b32.xlu0 %v1009_v62, %s2557_s19  ;;  %v1199_v62 = vld [vmem:[#allocation2 + $0x20] sm:$0xff] }
 0x6ab   : >> { %v1012_v0 = vpop.permute.xlu0 %1011 }
 0x6ac   : >> { %v1014_v1 = vadd.f32 %v1012_v0, %v1004_v63 }
 0x6ae   : >> { %2336 = vtanh.f32 %v1014_v1 }
 0x6b8   : >> { %v2337_v2 = vpop.eup %2336 }
 0x6b9   : >> { %1017 = vrot.lane.b32.xlu1 %v2337_v2, %s2556_s26 }
 0x72b   : >> { %v1018_v3 = vpop.permute.xlu1 %1017 }
 0x72c   : >> { %v1020_v4 = vmul.f32 %v2335_v60, %v1018_v3 }
 0x72e   : >> { %v2870_v5 = vpack.c.bf16 %v1020_v4, %v1020_v4 }
 0x730   : >> { %1034 = vrot.lane.b32.xlu0 %v2870_v5, %s2557_s19 }
 0x7a2   : >> { %v1035_v6 = vpop.permute.xlu0 %1034 }
 0x7a3   : >> { %2142 = vmatmul.mubr.msk.bf16.vlgmr.msra.gmra.mrb[4].mxu0 %vm865_vm3, %v1035_v6 }
 0x7a4   : >> { %2154 = vmatpush3.bf16.msra.mxu0 %v2822_v15  ;;  %2157 = vmatprep.mubr.msk.bf16.mxu0 %vm2555_vm2, %v2554_v27 }
 0x7a5   : >> { %2155 = vmatprep.subr.bf16.mxu0 %v2554_v27 }
 0x7a8   : >> { %2156 = vmatpush3.bf16.msra.mxu0 %v2830_v28 }
 0x7a9   : >> { %2169 = vmatprep.subr.bf16.mxu0 %v2554_v27 }
 0x876   : >> { %v1073_v8 = vpop.f32.mrb[4].mxu0 }
 0x877   : >> { %v1079_v9 = vadd.f32 %v1073_v8, %v1033_v7  ;;  %v2143_v10 = vpop.f32.mrb[5].mxu0 }
 0x878   : >> { %v1076_v11 = vpop.f32.mrb[6].mxu0 }
 0x879   : >> { %2338 = vtanh.f32 %v1079_v9  ;;  %v2144_v12 = vpop.f32.mrb[7].mxu0  ;;  %v1996_v14 = vmul.f32 -1.442695, %v1079_v9 }
 0x87b   : >> { %2340 = vpow2.f32 %v1996_v14 }
 0x883   : >> { %v2339_v13 = vpop.eup %2338 }
 0x884   : >> { %1089 = vrot.lane.b32.xlu1 %v2339_v13, %s2556_s26 }
 0x885   : >> { %v2341_v29 = vpop.eup %2340 }
 0x886   : >> { %v1083_v25 = vadd.f32 1.0, %v2341_v29 }
 0x888   : >> { %2342 = vrcp.f32 %v1083_v25 }
 0x892   : >> { %v2343_v30 = vpop.eup %2342 }
 0x893   : >> { %v1087_v33 = vmul.f32 %v2343_v30, %v1014_v1 }
 0x8f6   : >> { %v1090_v31 = vpop.permute.xlu1 %1089 }
 0x8f7   : >> { %v1092_v32 = vmul.f32 %v2343_v30, %v1090_v31 }
 0x8f9   : >> { %1094 = vrot.lane.b32.xlu0 %v1092_v32, %s2557_s19 }
 0x96b   : >> { %v1095_v34 = vpop.permute.xlu0 %1094 }
 0x96c   : >> { %v1097_v35 = vadd.f32 %v1095_v34, %v1087_v33  ;;  %v1282_v33 = vld [vmem:[#allocation2 + $0x28] sm:$0xff] }
 0x96e   : >> { %2344 = vtanh.f32 %v1097_v35 }
 0x978   : >> { %v2345_v36 = vpop.eup %2344 }
 0x979   : >> { %1100 = vrot.lane.b32.xlu1 %v2345_v36, %s2556_s26 }
 0x9eb   : >> { %v1101_v37 = vpop.permute.xlu1 %1100 }
 0x9ec   : >> { %v1103_v38 = vmul.f32 %v2343_v30, %v1101_v37 }
 0x9ee   : >> { %v2884_v39 = vpack.c.bf16 %v1103_v38, %v1103_v38 }
 0x9f0   : >> { %1117 = vrot.lane.b32.xlu0 %v2884_v39, %s2557_s19 }
 0xa62   : >> { %v1118_v40 = vpop.permute.xlu0 %1117 }
 0xa63   : >> { %2150 = vmatmul.mubr.msk.bf16.vlgmr.msra.gmra.mrb[4].mxu1 %vm865_vm3, %v1118_v40 }
 0xa64   : >> { %2162 = vmatpush3.bf16.msra.mxu1 %v2822_v15  ;;  %2165 = vmatprep.mubr.msk.bf16.mxu1 %vm2555_vm2, %v2554_v27 }
 0xa65   : >> { %2163 = vmatprep.subr.bf16.mxu1 %v2554_v27 }
 0xa68   : >> { %2164 = vmatpush3.bf16.msra.mxu1 %v2830_v28 }
 0xa69   : >> { %2177 = vmatprep.subr.bf16.mxu1 %v2554_v27 }
 0xb36   : >> { %v1156_v42 = vpop.f32.mrb[4].mxu1 }
 0xb37   : >> { %v1162_v43 = vadd.f32 %v1156_v42, %v1116_v41  ;;  %v2151_v44 = vpop.f32.mrb[5].mxu1 }
 0xb38   : >> { %v1159_v45 = vpop.f32.mrb[6].mxu1 }
 0xb39   : >> { %2346 = vtanh.f32 %v1162_v43  ;;  %v2152_v46 = vpop.f32.mrb[7].mxu1  ;;  %v2002_v26 = vmul.f32 -1.442695, %v1162_v43 }
 0xb3b   : >> { %2348 = vpow2.f32 %v2002_v26 }
 0xb43   : >> { %v2347_v47 = vpop.eup %2346 }
 0xb44   : >> { %1172 = vrot.lane.b32.xlu1 %v2347_v47, %s2556_s26 }
 0xb45   : >> { %v2349_v49 = vpop.eup %2348 }
 0xb46   : >> { %v1166_v50 = vadd.f32 1.0, %v2349_v49 }
 0xb48   : >> { %2350 = vrcp.f32 %v1166_v50 }
 0xb52   : >> { %v2351_v51 = vpop.eup %2350 }
 0xb53   : >> { %v1170_v54 = vmul.f32 %v2351_v51, %v1097_v35 }
 0xbb6   : >> { %v1173_v52 = vpop.permute.xlu1 %1172 }
 0xbb7   : >> { %v1175_v53 = vmul.f32 %v2351_v51, %v1173_v52  ;;  %v1365_v52 = vld [vmem:[#allocation2 + $0x30] sm:$0xff] }
 0xbb9   : >> { %1177 = vrot.lane.b32.xlu0 %v1175_v53, %s2557_s19 }
 0xc2b   : >> { %v1178_v55 = vpop.permute.xlu0 %1177 }
 0xc2c   : >> { %v1180_v56 = vadd.f32 %v1178_v55, %v1170_v54 }
 0xc2e   : >> { %2352 = vtanh.f32 %v1180_v56 }
 0xc38   : >> { %v2353_v57 = vpop.eup %2352 }
 0xc39   : >> { %1183 = vrot.lane.b32.xlu1 %v2353_v57, %s2556_s26 }
 0xcab   : >> { %v1184_v58 = vpop.permute.xlu1 %1183 }
 0xcac   : >> { %v1186_v59 = vmul.f32 %v2351_v51, %v1184_v58 }
 0xcae   : >> { %v2898_v60 = vpack.c.bf16 %v1186_v59, %v1186_v59 }
 0xcb0   : >> { %1200 = vrot.lane.b32.xlu0 %v2898_v60, %s2557_s19 }
 0xd22   : >> { %v1201_v61 = vpop.permute.xlu0 %1200 }
 0xd23   : >> { %2158 = vmatmul.mubr.msk.bf16.vlgmr.msra.gmra.mrb[8].mxu0 %vm865_vm3, %v1201_v61 }
 0xd24   : >> { %2170 = vmatpush3.bf16.msra.mxu0 %v2822_v15  ;;  %2173 = vmatprep.mubr.msk.bf16.mxu0 %vm2555_vm2, %v2554_v27 }
 0xd25   : >> { %2171 = vmatprep.subr.bf16.mxu0 %v2554_v27 }
 0xd28   : >> { %2172 = vmatpush3.bf16.msra.mxu0 %v2830_v28 }
 0xdf6   : >> { %v1239_v63 = vpop.f32.mrb[8].mxu0 }
 0xdf7   : >> { %v1245_v0 = vadd.f32 %v1239_v63, %v1199_v62  ;;  %v2159_v1 = vpop.f32.mrb[9].mxu0 }
 0xdf8   : >> { %v1242_v2 = vpop.f32.mrb[10].mxu0 }
 0xdf9   : >> { %2354 = vtanh.f32 %v1245_v0  ;;  %v2160_v3 = vpop.f32.mrb[11].mxu0  ;;  %v2008_v6 = vmul.f32 -1.442695, %v1245_v0 }
 0xdfb   : >> { %2356 = vpow2.f32 %v2008_v6 }
 0xe03   : >> { %v2355_v4 = vpop.eup %2354 }
 0xe04   : >> { %1255 = vrot.lane.b32.xlu1 %v2355_v4, %s2556_s26 }
 0xe05   : >> { %v2357_v7 = vpop.eup %2356 }
 0xe06   : >> { %v1249_v8 = vadd.f32 1.0, %v2357_v7 }
 0xe08   : >> { %2358 = vrcp.f32 %v1249_v8 }
 0xe12   : >> { %v2359_v9 = vpop.eup %2358 }
 0xe13   : >> { %v1253_v12 = vmul.f32 %v2359_v9, %v1180_v56 }
 0xe76   : >> { %v1256_v10 = vpop.permute.xlu1 %1255 }
 0xe77   : >> { %v1258_v11 = vmul.f32 %v2359_v9, %v1256_v10 }
 0xe79   : >> { %1260 = vrot.lane.b32.xlu0 %v1258_v11, %s2557_s19  ;;  %v1448_v11 = vld [vmem:[#allocation2 + $0x38] sm:$0xff] }
 0xeeb   : >> { %v1261_v13 = vpop.permute.xlu0 %1260 }
 0xeec   : >> { %v1263_v14 = vadd.f32 %v1261_v13, %v1253_v12 }
 0xeee   : >> { %2360 = vtanh.f32 %v1263_v14 }
 0xef8   : >> { %v2361_v29 = vpop.eup %2360 }
 0xef9   : >> { %1266 = vrot.lane.b32.xlu1 %v2361_v29, %s2556_s26 }
 0xf6b   : >> { %v1267_v25 = vpop.permute.xlu1 %1266 }
 0xf6c   : >> { %v1269_v30 = vmul.f32 %v2359_v9, %v1267_v25 }
 0xf6e   : >> { %v2911_v31 = vpack.c.bf16 %v1269_v30, %v1269_v30 }
 0xf70   : >> { %1283 = vrot.lane.b32.xlu0 %v2911_v31, %s2557_s19 }
 0xfe2   : >> { %v1284_v32 = vpop.permute.xlu0 %1283 }
 0xfe3   : >> { %2166 = vmatmul.mubr.msk.bf16.vlgmr.msra.gmra.mrb[8].mxu1 %vm865_vm3, %v1284_v32 }
 0xfe4   : >> { %2178 = vmatpush3.bf16.msra.mxu1 %v2822_v15  ;;  %2181 = vmatprep.mubr.msk.bf16.mxu1 %vm2555_vm2, %v2554_v27 }
 0xfe5   : >> { %2179 = vmatprep.subr.bf16.mxu1 %v2554_v27 }
 0xfe8   : >> { %2180 = vmatpush3.bf16.msra.mxu1 %v2830_v28 }
0x10b6   : >> { %v1322_v34 = vpop.f32.mrb[8].mxu1 }
0x10b7   : >> { %v1328_v35 = vadd.f32 %v1322_v34, %v1282_v33  ;;  %v2167_v36 = vpop.f32.mrb[9].mxu1 }
0x10b8   : >> { %v1325_v37 = vpop.f32.mrb[10].mxu1 }
0x10b9   : >> { %2362 = vtanh.f32 %v1328_v35  ;;  %v2168_v38 = vpop.f32.mrb[11].mxu1  ;;  %v2014_v41 = vmul.f32 -1.442695, %v1328_v35 }
0x10bb   : >> { %2364 = vpow2.f32 %v2014_v41 }
0x10c3   : >> { %v2363_v40 = vpop.eup %2362 }
0x10c4   : >> { %1338 = vrot.lane.b32.xlu1 %v2363_v40, %s2556_s26 }
0x10c5   : >> { %v2365_v15 = vpop.eup %2364 }
0x10c6   : >> { %v1332_v42 = vadd.f32 1.0, %v2365_v15 }
0x10c8   : >> { %2366 = vrcp.f32 %v1332_v42 }
0x10d2   : >> { %v2367_v43 = vpop.eup %2366 }
0x10d3   : >> { %v1336_v28 = vmul.f32 %v2367_v43, %v1263_v14 }
0x1136   : >> { %v1339_v44 = vpop.permute.xlu1 %1338 }
0x1137   : >> { %v1341_v27 = vmul.f32 %v2367_v43, %v1339_v44 }
0x1139   : >> { %1343 = vrot.lane.b32.xlu0 %v1341_v27, %s2557_s19 }
0x11ab   : >> { %v1344_v45 = vpop.permute.xlu0 %1343 }
0x11ac   : >> { %v1346_v46 = vadd.f32 %v1344_v45, %v1336_v28 }
0x11ae   : >> { %2368 = vtanh.f32 %v1346_v46 }
0x11b8   : >> { %v2369_v47 = vpop.eup %2368 }
0x11b9   : >> { %1349 = vrot.lane.b32.xlu1 %v2369_v47, %s2556_s26 }
0x122b   : >> { %v1350_v26 = vpop.permute.xlu1 %1349 }
0x122c   : >> { %v1352_v49 = vmul.f32 %v2367_v43, %v1350_v26 }
0x122e   : >> { %v2924_v50 = vpack.c.bf16 %v1352_v49, %v1352_v49 }
0x1230   : >> { %1366 = vrot.lane.b32.xlu0 %v2924_v50, %s2557_s19 }
0x12a2   : >> { %v1367_v51 = vpop.permute.xlu0 %1366 }
0x12a3   : >> { %2174 = vmatmul.mubr.msk.bf16.vlgmr.msra.gmra.mrb[12].mxu0 %vm865_vm3, %v1367_v51 }
0x1376   : >> { %v1405_v53 = vpop.f32.mrb[12].mxu0 }
0x1377   : >> { %v1411_v54 = vadd.f32 %v1405_v53, %v1365_v52  ;;  %v2175_v55 = vpop.f32.mrb[13].mxu0 }
0x1378   : >> { %v1408_v56 = vpop.f32.mrb[14].mxu0 }
0x1379   : >> { %2370 = vtanh.f32 %v1411_v54  ;;  %v2176_v57 = vpop.f32.mrb[15].mxu0  ;;  %v2020_v59 = vmul.f32 -1.442695, %v1411_v54 }
0x137b   : >> { %2372 = vpow2.f32 %v2020_v59 }
0x1383   : >> { %v2371_v58 = vpop.eup %2370 }
0x1384   : >> { %1421 = vrot.lane.b32.xlu1 %v2371_v58, %s2556_s26 }
0x1385   : >> { %v2373_v61 = vpop.eup %2372 }
0x1386   : >> { %v1415_v62 = vadd.f32 1.0, %v2373_v61 }
0x1388   : >> { %2374 = vrcp.f32 %v1415_v62 }
0x1392   : >> { %v2375_v63 = vpop.eup %2374 }
0x1393   : >> { %v1419_v2 = vmul.f32 %v2375_v63, %v1346_v46 }
0x13f6   : >> { %v1422_v0 = vpop.permute.xlu1 %1421 }
0x13f7   : >> { %v1424_v1 = vmul.f32 %v2375_v63, %v1422_v0 }
0x13f9   : >> { %1426 = vrot.lane.b32.xlu0 %v1424_v1, %s2557_s19 }
0x146b   : >> { %v1427_v3 = vpop.permute.xlu0 %1426 }
0x146c   : >> { %v1429_v4 = vadd.f32 %v1427_v3, %v1419_v2 }
0x146e   : >> { %2376 = vtanh.f32 %v1429_v4 }
0x1478   : >> { %v2377_v6 = vpop.eup %2376 }
0x1479   : >> { %1432 = vrot.lane.b32.xlu1 %v2377_v6, %s2556_s26 }
0x14eb   : >> { %v1433_v7 = vpop.permute.xlu1 %1432 }
0x14ec   : >> { %v1435_v8 = vmul.f32 %v2375_v63, %v1433_v7 }
0x14ee   : >> { %v1436_v9 = vpack.c.bf16 %v1435_v8, %v1435_v8 }
0x14f0   : >> { %1449 = vrot.lane.b32.xlu0 %v1436_v9, %s2557_s19 }
0x1562   : >> { %v1450_v10 = vpop.permute.xlu0 %1449 }
0x1563   : >> { %2182 = vmatmul.mubr.msk.bf16.vlgmr.msra.gmra.mrb[12].mxu1 %vm865_vm3, %v1450_v10 }
0x1636   : >> { %v1488_v12 = vpop.f32.mrb[12].mxu1 }
0x1637   : >> { %v1494_v13 = vadd.f32 %v1488_v12, %v1448_v11  ;;  %v2183_v14 = vpop.f32.mrb[13].mxu1 }
0x1638   : >> { %v1491_v29 = vpop.f32.mrb[14].mxu1 }
0x1639   : >> { %2378 = vtanh.f32 %v1494_v13  ;;  %v2184_v25 = vpop.f32.mrb[15].mxu1  ;;  %v2026_v32 = vmul.f32 -1.442695, %v1494_v13 }
0x163b   : >> { %2380 = vpow2.f32 %v2026_v32 }
0x1643   : >> { %v2379_v30 = vpop.eup %2378 }
0x1644   : >> { %1504 = vrot.lane.b32.xlu1 %v2379_v30, %s2556_s26 }
0x1645   : >> { %v2381_v33 = vpop.eup %2380 }
0x1646   : >> { %v1498_v34 = vadd.f32 1.0, %v2381_v33 }
0x1648   : >> { %2382 = vrcp.f32 %v1498_v34 }
0x1652   : >> { %v2383_v35 = vpop.eup %2382 }
0x1653   : >> { %v1502_v38 = vmul.f32 %v2383_v35, %v1429_v4 }
0x16b6   : >> { %v1505_v36 = vpop.permute.xlu1 %1504 }
0x16b7   : >> { %v1507_v37 = vmul.f32 %v2383_v35, %v1505_v36 }
0x16b9   : >> { %1509 = vrot.lane.b32.xlu0 %v1507_v37, %s2557_s19 }
0x16bd   : >> { %942 = vrot.lane.b32.xlu0 %v2856_v48, %s2557_s19 }
0x16c1   : >> { %1109 = vrot.lane.b32.xlu0 %v2884_v39, %s2557_s19 }
0x16c5   : >> { %1275 = vrot.lane.b32.xlu0 %v2911_v31, %s2557_s19 }
0x16c9   : >> { %1441 = vrot.lane.b32.xlu0 %v1436_v9, %s2557_s19 }
0x172b   : >> { %v1510_v40 = vpop.permute.xlu0 %1509 }
0x172c   : >> { %v1512_v41 = vadd.f32 %v1510_v40, %v1502_v38 }
0x172e   : >> { %2384 = vtanh.f32 %v1512_v41 }
0x172f   : >> { %v943_v48 = vpop.permute.xlu0 %942 }
0x1730   : >> { %948 = vst.msk [vmem:[%s2945_s13] sm:$0xf] %vm947_vm4, %v943_v48 }
0x1733   : >> { %v1110_v39 = vpop.permute.xlu0 %1109 }
0x1734   : >> { %2000 = vst.msk [vmem:[%s2945_s13 + $0x8] sm:$0xf] %vm947_vm4, %v1110_v39 }
0x1737   : >> { %v1276_v31 = vpop.permute.xlu0 %1275 }
0x1738   : >> { %v2385_v15 = vpop.eup %2384  ;;  %2012 = vst.msk [vmem:[%s2945_s13 + $0x10] sm:$0xf] %vm947_vm4, %v1276_v31 }
0x1739   : >> { %1515 = vrot.lane.b32.xlu1 %v2385_v15, %s2556_s26 }
0x173b   : >> { %v1442_v42 = vpop.permute.xlu0 %1441 }
0x173c   : >> { %2024 = vst.msk [vmem:[%s2945_s13 + $0x18] sm:$0xf] %vm947_vm4, %v1442_v42 }
0x173d   : >> { %1026 = vrot.lane.b32.xlu1 %v2870_v5, %s2557_s19 }
0x1741   : >> { %1192 = vrot.lane.b32.xlu1 %v2898_v60, %s2557_s19 }
0x1745   : >> { %1358 = vrot.lane.b32.xlu1 %v2924_v50, %s2557_s19 }
0x17ab   : >> { %v1516_v43 = vpop.permute.xlu1 %1515 }
0x17ac   : >> { %v1518_v44 = vmul.f32 %v2383_v35, %v1516_v43 }
0x17ae   : >> { %v2059_v27 = vpack.c.bf16 %v1518_v44, %v1518_v44  ;;  %1531 = vrot.lane.b32.xlu0 %v1518_v44, %s2557_s19 }
0x17af   : >> { %v1027_v28 = vpop.permute.xlu1 %1026 }
0x17b0   : >> { %1994 = vst.msk [vmem:[%s2945_s13 + $0x4] sm:$0xf] %vm947_vm4, %v1027_v28  ;;  %1524 = vrot.lane.b32.xlu1 %v2059_v27, %s2557_s19 }
0x17b3   : >> { %v1193_v45 = vpop.permute.xlu1 %1192 }
0x17b4   : >> { %2006 = vst.msk [vmem:[%s2945_s13 + $0xc] sm:$0xf] %vm947_vm4, %v1193_v45  ;;  %1535 = vrot.lane.b32.xlu1 %v1512_v41, %s2558_s0 }
0x17b7   : >> { %v1359_v5 = vpop.permute.xlu1 %1358 }
0x17b8   : >> { %2018 = vst.msk [vmem:[%s2945_s13 + $0x14] sm:$0xf] %vm947_vm4, %v1359_v5 }
0x1820   : >> { %v1532_v60 = vpop.permute.xlu0 %1531  }
0x1821   : >> { %v3131_v25 = vmov %v1532_v60  ;;  %570 = sbr.rel (!%p568_p9) target bundleno = 80 (0x50), region = 242  ;;  %1539 = vst.msk [vmem:[%s2784_s17] sm:$0xff] (%p568_p9), %vm865_vm3, %v1532_v60 }
0x1822   : >> { %v1525_v46 = vpop.permute.xlu1 %1524 }
0x1823   : >> { %2030 = vst.msk [vmem:[%s2945_s13 + $0x1c] sm:$0xf] %vm947_vm4, %v1525_v46 }
0x1826   : >> { %v1536_v47 = vpop.permute.xlu1 %1535  }
0x1827   : >> { %v3130_v26 = vmov %v1536_v47  ;;  %1540 = vst.msk [vmem:[%s2786_s20] sm:$0xff] (%p568_p9), %vm865_vm3, %v1536_v47 }
0x1828   : > { %1557 = sbr.rel (!%p2679_p6) target bundleno = 6197 (0x1835), region = 104  ;;  %s2034_s21 = sshll.u32 (%p2679_p6), %s2528_s11, 2 }
0x1829   : > { %s1559_s8 = scalar_lea.vmem (%p2679_p6), %s3100_s6, %s2034_s21 }
0x182a   : > { %v1575_v16 = vld [vmem:[%s2782_s9] sm:$0xf] (%p2679_p6)  ;;  %v1577_v17 = vld [vmem:[%s2782_s9 + $0x4] sm:$0xf] (%p2679_p6)  ;;  %v1579_v18 = vld [vmem:[%s2782_s9 + $0x8] sm:$0xf] (%p2679_p6) }
0x182b   : > { %v1581_v19 = vld [vmem:[%s2782_s9 + $0xc] sm:$0xf] (%p2679_p6)  ;;  %v1583_v20 = vld [vmem:[%s2782_s9 + $0x10] sm:$0xf] (%p2679_p6)  ;;  %1576 = vst [vmem:[%s1559_s8] sm:$0xf] (%p2679_p6), %v1575_v16 }
0x182c   : > { %1578 = vst [vmem:[%s1559_s8 + $0x8] sm:$0xf] (%p2679_p6), %v1577_v17  ;;  %1580 = vst [vmem:[%s1559_s8 + $0x10] sm:$0xf] (%p2679_p6), %v1579_v18  ;;  %v1585_v21 = vld [vmem:[%s2782_s9 + $0x14] sm:$0xf] (%p2679_p6) }
0x182d   : > { %1582 = vst [vmem:[%s1559_s8 + $0x18] sm:$0xf] (%p2679_p6), %v1581_v19  ;;  %1584 = vst [vmem:[%s1559_s8 + $0x20] sm:$0xf] (%p2679_p6), %v1583_v20  ;;  %v1587_v22 = vld [vmem:[%s2782_s9 + $0x18] sm:$0xf] (%p2679_p6) }
0x182e   : > { %v1589_v23 = vld [vmem:[%s2782_s9 + $0x1c] sm:$0xf] (%p2679_p6)  ;;  %1586 = vst [vmem:[%s1559_s8 + $0x28] sm:$0xf] (%p2679_p6), %v1585_v21  ;;  %1588 = vst [vmem:[%s1559_s8 + $0x30] sm:$0xf] (%p2679_p6), %v1587_v22 }
0x182f   : > { %1590 = vst [vmem:[%s1559_s8 + $0x38] sm:$0xf] %v1589_v23  ;;  %v1591_v24 = vld [vmem:[%s2782_s9 + $0x20] sm:$0xf]  ;;  %v1593_v26 = vld [vmem:[%s2782_s9 + $0x24] sm:$0xf] }
0x1830   : > { %v1595_v49 = vld [vmem:[%s2782_s9 + $0x28] sm:$0xf]  ;;  %1592 = vst [vmem:[%s1559_s8 + $0x40] sm:$0xf] %v1591_v24  ;;  %1594 = vst [vmem:[%s1559_s8 + $0x48] sm:$0xf] %v1593_v26 }
0x1831   : > { %1596 = vst [vmem:[%s1559_s8 + $0x50] sm:$0xf] %v1595_v49  ;;  %v1597_v50 = vld [vmem:[%s2782_s9 + $0x2c] sm:$0xf]  ;;  %v1599_v51 = vld [vmem:[%s2782_s9 + $0x30] sm:$0xf] }
0x1832   : > { %v1601_v52 = vld [vmem:[%s2782_s9 + $0x34] sm:$0xf]  ;;  %1598 = vst [vmem:[%s1559_s8 + $0x58] sm:$0xf] %v1597_v50  ;;  %1600 = vst [vmem:[%s1559_s8 + $0x60] sm:$0xf] %v1599_v51 }
0x1833   : > { %1602 = vst [vmem:[%s1559_s8 + $0x68] sm:$0xf] %v1601_v52  ;;  %v1603_v53 = vld [vmem:[%s2782_s9 + $0x38] sm:$0xf]  ;;  %v1605_v54 = vld [vmem:[%s2782_s9 + $0x3c] sm:$0xf] }
0x1834   : > { %1604 = vst [vmem:[%s1559_s8 + $0x70] sm:$0xf] %v1603_v53  ;;  %1606 = vst [vmem:[%s1559_s8 + $0x78] sm:$0xf] %v1605_v54 }
0x1835 PF: > { %s2035_s23 = sshll.u32 %s2524_s10, 1  ;;  %s1670_s29 = sshll.u32 %s2784_s17, 4  ;;  %s3010_s29 = int_to_ptr.vmem [resolvable:$true] %s1670_s29 }
0x1836   : > { %s1666_s22 = sadd.s32 %s2528_s11, %s2035_s23  ;;  %s1685_s26 = sshll.u32 %s2786_s20, 4  ;;  %s1686_s26 = int_to_ptr.vmem [resolvable:$true] %s1685_s26 }
0x1837   : > { %s2036_s30 = sshll.u32 %s1666_s22, 7  ;;  %s3132_s21 = sld [smem:[#allocation22_spill]] }
0x1838   : > { %s1668_s24 = scalar_lea.hbm %s3101_s7, %s2036_s30  ;;  %s2386_s25 = scalar_lea.vmem %s3010_s29, 128 }
0x1839   : > { %p2387_p6 = scmp.ne.s32.totalorder %s3010_s29, %s2386_s25  ;;  %s2559_s10 = smov [#allocation5]  }
0x183a   : > { %s2390_s11 = sshll.u32 %s2559_s10, 4  ;;  %s2391_s11 = int_to_ptr.vmem [resolvable:$false] %s2390_s11 }
0x183b   : > { %p2388_p10 = pnand %p2387_p6, %p2694_p12  ;;  %s2392_s17 = scalar_lea.vmem %s2391_s11, 256 }
0x183c   : > { %p2393_p0 = scmp.lt.s32.totalorder %s3010_s29, %s2391_s11  ;;  %p2394_p1 = scmp.lt.s32.totalorder %s2392_s17, %s2386_s25 }
0x183d   : > { %s3019_s28 = scalar_lea.hbm %s3132_s21, %s2036_s30  ;;  %p2389_p11 = pneg %p2388_p10 }
0x183e   : > { %p2395_p2 = por %p2394_p1, %p2393_p0 }
0x1840   : > { %p2396_p3 = pnand %p2395_p2, %p2389_p11 }
0x1842   : > { %2399 = shalt.err (!%p2396_p3)
}
0x1843   : > { %s2400_s8 = scalar_lea.hbm %s1668_s24, 128  ;;  %s2404_s30 = scalar_lea.hbm %s3101_s7, 512 }
0x1844   : > { %p2401_p4 = scmp.ne.s32.totalorder %s1668_s24, %s2400_s8  ;;  %p2405_p8 = scmp.lt.u32.totalorder %s1668_s24, %s3101_s7 }
0x1845   : > { %p2406_p9 = scmp.lt.u32.totalorder %s2404_s30, %s2400_s8  ;;  %p2408_p10 = scmp.lt.u32.totalorder %s2400_s8, %s1668_s24 }
0x1846   : > { %p2402_p5 = pnand %p2401_p4, %p2694_p12 }
0x1847   : > { %p2407_p6 = por %p2406_p9, %p2405_p8 }
0x1848   : > { %p2403_p7 = pneg %p2402_p5 }
0x1849   : > { %p2409_p0 = por %p2408_p10, %p2407_p6 }
0x184b   : > { %p2410_p11 = pnand %p2409_p0, %p2403_p7 }
0x184d   : > { %2413 = shalt.err (!%p2410_p11)
}
0x184e   : > { %2193 = dma.vmem_to_hbm [thread:$0]  (%p2694_p12), %s3010_s29, 128, %s1668_s24, %s1546_s12  }
0x184f   : > { %s2414_s13 = scalar_lea.vmem %s1686_s26, 128  ;;  %s2560_s0 = smov [#allocation7]  }
0x1850   : > { %p2415_p1 = scmp.ne.s32.totalorder %s1686_s26, %s2414_s13  ;;  %s2418_s25 = sshll.u32 %s2560_s0, 4  ;;  %s2419_s25 = int_to_ptr.vmem [resolvable:$false] %s2418_s25 }
0x1851   : > { %s2420_s10 = scalar_lea.vmem %s2419_s25, 256  ;;  %p2421_p4 = scmp.lt.s32.totalorder %s1686_s26, %s2419_s25 }
0x1852   : > { %p2416_p2 = pnand %p2415_p1, %p2694_p12  ;;  %p2422_p5 = scmp.lt.s32.totalorder %s2420_s10, %s2414_s13 }
0x1854   : > { %p2417_p3 = pneg %p2416_p2  ;;  %p2423_p7 = por %p2422_p5, %p2421_p4 }
0x1856   : > { %p2424_p8 = pnand %p2423_p7, %p2417_p3 }
0x1858   : > { %2427 = shalt.err (!%p2424_p8)
}
0x1859   : > { %s2428_s20 = scalar_lea.hbm %s3019_s28, 128  ;;  %s2432_s24 = scalar_lea.hbm %s3132_s21, 512 }
0x185a   : > { %p2429_p9 = scmp.ne.s32.totalorder %s3019_s28, %s2428_s20  ;;  %p2433_p0 = scmp.lt.u32.totalorder %s3019_s28, %s3132_s21 }
0x185b   : > { %p2434_p11 = scmp.lt.u32.totalorder %s2432_s24, %s2428_s20  ;;  %p2436_p2 = scmp.lt.u32.totalorder %s2428_s20, %s3019_s28 }
0x185c   : > { %p2430_p6 = pnand %p2429_p9, %p2694_p12 }
0x185d   : > { %p2435_p1 = por %p2434_p11, %p2433_p0 }
0x185e   : > { %p2431_p10 = pneg %p2430_p6 }
0x185f   : > { %p2437_p3 = por %p2436_p2, %p2435_p1 }
0x1861   : > { %p2438_p4 = pnand %p2437_p3, %p2431_p10 }
0x1863   : > { %2441 = shalt.err (!%p2438_p4)
}
0x1864   : > { %2194 = dma.vmem_to_hbm [thread:$0]  (%p2694_p12), %s1686_s26, 128, %s3019_s28, %s1551_s18  }
0x1865 PF: > { %p2204_p5 = scmp.ge.s32.totalorder %s2540_s14, 2  ;;  %s1704_s23 = sand.u32 1, %s2504_s27  }
0x1866   : > { %s1705_s22 = scalar_lea.sflag [#allocation6], %s1704_s23 }
0x1867   : > { %p2198_p7 = pnand %p2204_p5, %p2704_p13 }
0x1869   : > { %2495 = dma.done.wait (!%p2198_p7), %s1705_s22, 128  }
0x186a   : > { %2497 = vsyncadd (!%p2198_p7), %s1705_s22, 4294967168  ;;  %s1714_s30 = scalar_lea.sflag [#allocation8], %s1704_s23 }
0x186b   : > { %2499 = dma.done.wait (!%p2198_p7), %s1714_s30, 128  }
0x186c   : > { %2501 = vsyncadd (!%p2198_p7), %s1714_s30, 4294967168  ;;  %s25_s14 = sadd.s32 1, %s2540_s14   ;;  %s3134_s27 = sld [smem:[#allocation11_spill]] }
0x186d   : > { %p22_p8 = scmp.ge.s32.totalorder %s25_s14, 6   ;;  %s3135_s28 = sld [smem:[#allocation12_spill]] }
0x186e   : > { %s3136_s29 = sld [smem:[#allocation19_spill]]  ;;  %s3137_s30 = sld [smem:[#allocation13_spill]] }
0x186f   : > { %s3138_s9 = sld [smem:[#allocation18_spill]]  ;;  %s3139_s10 = sld [smem:[#allocation14_spill]] }
0x1870   : > { %s3140_s11 = sld [smem:[#allocation15_spill]]  ;;  %s3141_s12 = sld [smem:[#allocation16_spill]] }
0x1871   : > { %s3142_s13 = sld [smem:[#allocation17_spill]]  ;;  %24 = sbr.rel (!%p22_p8) target bundleno = 11 (0xb), region = 253 }
0x1878   :  { %1719 = vsyncpa [#allocation6], 1 }
0x1879   :  { %1721 = vsyncpa [#allocation6 + $0x1], 1 }
0x187a   :  { %1722 = vsyncpa [#allocation8], 1 }
0x187b   :  { %1724 = vsyncpa [#allocation8 + $0x1], 1 }

</bundles_post_ra>
